<compile_context>
chip_gen: v7x
topology: tpu7x:2x2x1
jax: 0.10.0
libtpu: 0.0.40
codegen_flags: <defaults>
</compile_context>

<pallas_src>
import math
import functools

import jax
import jax.numpy as jnp
from jax.experimental import pallas as pl
from jax.experimental.pallas import tpu as pltpu

# ---------------------------------------------------------------------------
# Model configuration (small, consistent with the module's constructor args)
# ---------------------------------------------------------------------------
NUM_PATCHES = 7            # -> sequence length = num_patches + 1 = 8
INPUT_DIM   = 32           # dim
DEPTH       = 2
HEADS       = 4
DIM_HEAD    = 8
MLP_DIM     = 64
INNER       = HEADS * DIM_HEAD              # 32
SEQ         = NUM_PATCHES + 1               # 8
PROJ_COLS   = 2 * INNER + HEADS * INPUT_DIM  # 192 = [Q(32) | K(32) | V@Wo(128)]
EPS         = 1e-5
BATCH       = 2

_MM_DTYPES = {"float32": jnp.float32, "bfloat16": jnp.bfloat16}


def _layernorm(x, gamma, beta):
    mean = jnp.mean(x, axis=-1, keepdims=True)
    var = jnp.mean(jnp.square(x - mean), axis=-1, keepdims=True)
    return (x - mean) * jax.lax.rsqrt(var + EPS) * gamma + beta


def _gelu_tanh(x):
    c = math.sqrt(2.0 / math.pi)
    return 0.5 * x * (1.0 + jnp.tanh(c * (x + 0.044715 * x ** 3)))


# ---------------------------------------------------------------------------
# Pallas kernel: whole batch tile per grid step, full transformer in VMEM.
# ---------------------------------------------------------------------------
def transformer_kernel(x_ref, pos_ref, wproj_ref, w1b_ref, w2_ref, vecd_ref,
                       out_ref):
    bt, n, d = x_ref.shape
    m = bt * n
    mm_dtype = wproj_ref.dtype        # MXU operand dtype (f32 or bf16)

    # x + pos_embedding, then fold (batch, tokens) -> M rows for all matmuls.
    xf = (x_ref[...] + pos_ref[...]).reshape(m, d)                 # (M, D) f32

    def head_batch(t, col0, width):
        # (M, cols) -> (bt*HEADS, n, width) using only static lane slices,
        # sublane-group reshapes and leading-dim concatenation (no transposes).
        parts = [
            t[:, col0 + h * width: col0 + (h + 1) * width]
            .reshape(bt, 1, n, width)
            for h in range(HEADS)
        ]
        return jnp.concatenate(parts, axis=1).reshape(bt * HEADS, n, width)

    for l in range(DEPTH):                                         # static unroll
        # ------------------ Residual(PreNorm(Attention)) -------------------
        h1 = _layernorm(xf, vecd_ref[l, 0:1], vecd_ref[l, 1:2])    # (M, D)
        # ONE fused projection per layer: [Q*scale | K | V@Wo]  -> (M, 192)
        proj = jnp.dot(h1.astype(mm_dtype), wproj_ref[l],
                       preferred_element_type=jnp.float32)
        q  = head_batch(proj, 0, DIM_HEAD)          # (bt*H, n, DH) scale folded
        k  = head_batch(proj, INNER, DIM_HEAD)      # (bt*H, n, DH)
        vo = head_batch(proj, 2 * INNER, INPUT_DIM)  # (bt*H, n, D) = V_h @ Wo_h

        # Heads ride in the dot_general batch dim: 2 contractions per layer.
        dots = jax.lax.dot_general(
            q.astype(mm_dtype), k.astype(mm_dtype),
            (((2,), (2,)), ((0,), (0,))),
            preferred_element_type=jnp.float32)                     # (bt*H, n, n)
        dots = dots - jnp.max(dots, axis=-1, keepdims=True)
        e = jnp.exp(dots)
        p = e * pl.reciprocal(jnp.sum(e, axis=-1, keepdims=True), approx=True)
        obh = jax.lax.dot_general(
            p.astype(mm_dtype), vo.astype(mm_dtype),
            (((2,), (1,)), ((0,), (0,))),
            preferred_element_type=jnp.float32)                     # (bt*H, n, D)

        # Output projection is already folded in; just sum the head slabs.
        obh = obh.reshape(bt, HEADS, n, d)
        attn = obh[:, 0]
        for hh in range(1, HEADS):
            attn = attn + obh[:, hh]
        xf = xf + attn.reshape(m, d) + vecd_ref[l, 4:5]             # + bo, residual

        # ------------------ Residual(PreNorm(FeedForward)) ------------------
        h2 = _layernorm(xf, vecd_ref[l, 2:3], vecd_ref[l, 3:4])
        a = (jnp.dot(h2.astype(mm_dtype), w1b_ref[l, 0:INPUT_DIM, :],
                     preferred_element_type=jnp.float32)
             + w1b_ref[l, INPUT_DIM:INPUT_DIM + 1, :])              # + b1
        a = _gelu_tanh(a)
        y = jnp.dot(a.astype(mm_dtype), w2_ref[l],
                    preferred_element_type=jnp.float32)
        xf = xf + y + vecd_ref[l, 5:6]                              # + b2, residual

    # CLS token (token 0 of every sequence), lane-dense 2-D store.
    out_ref[...] = xf.reshape(bt, n, d)[:, 0, :].astype(out_ref.dtype)


# ---------------------------------------------------------------------------
# Wrapper: packs parameters into a few lane-dense slabs and launches the kernel.
# ---------------------------------------------------------------------------
@functools.partial(jax.jit, static_argnames=("b_tile", "matmul_dtype"))
def temporal_transformer_cls(x, pos, ln1g, ln1b, wq, wkv, wo, bo,
                             ln2g, ln2b, w1, b1, w2, b2,
                             *, b_tile=None, matmul_dtype="float32"):
    B, n, d = x.shape
    # Default tile: whole (small) batch per step; for realistic B this caps
    # M = bt*SEQ at a few thousand rows.  On v7x pass b_tile = cdiv(B, 2) so the
    # "parallel" grid has >= 2 steps and both TensorCores get work.
    bt = b_tile if b_tile is not None else max(1, min(B, 256))
    grid_b = pl.cdiv(B, bt)
    B_pad = grid_b * bt
    if B_pad != B:
        x = jnp.pad(x, ((0, B_pad - B), (0, 0), (0, 0)))

    mm = _MM_DTYPES[matmul_dtype]
    scale = DIM_HEAD ** (-0.5)

    # --- fused projection weight: [Wq*scale | Wk | Wv@Wo], (DEPTH, D, 192) ---
    wk = wkv[:, :, :INNER]
    wv = wkv[:, :, INNER:]
    wv_r = wv.reshape(DEPTH, d, HEADS, DIM_HEAD)          # (L, D, H, DH)
    wo_r = wo.reshape(DEPTH, HEADS, DIM_HEAD, d)          # (L, H, DH, D)
    # Wvo[l, h] = Wv_h @ Wo_h  (fold the output projection into V; exact algebra)
    wvo = jnp.einsum('ldhe,lhef->lhdf', wv_r, wo_r)       # (L, H, D, D)
    wvo_cols = wvo.transpose(0, 2, 1, 3).reshape(DEPTH, d, HEADS * d)
    wproj = jnp.concatenate([wq * scale, wk, wvo_cols], axis=-1).astype(mm)
    # --- W1 with its bias as an extra row: (DEPTH, D+1, MLP_DIM) ---
    w1b = jnp.concatenate([w1, b1], axis=1).astype(mm)
    # --- W2 stays (DEPTH, MLP_DIM, D); D-wide vectors share one f32 slab ---
    w2m = w2.astype(mm)
    vecd = jnp.concatenate([ln1g, ln1b, ln2g, ln2b, bo, b2], axis=1)  # (L, 6, D)

    full = lambda shape: pl.BlockSpec(shape, lambda i: (0,) * len(shape))
    out = pl.pallas_call(
        transformer_kernel,
        out_shape=jax.ShapeDtypeStruct((B_pad, d), jnp.float32),
        grid=(grid_b,),
        in_specs=[
            pl.BlockSpec((bt, n, d), lambda i: (i, 0, 0)),   # x (batch tile)
            full((1, n, d)),                                 # pos_embedding
            full((DEPTH, d, PROJ_COLS)),                     # fused Q|K|V@Wo
            full((DEPTH, d + 1, MLP_DIM)),                   # W1 (+ b1 row)
            full((DEPTH, MLP_DIM, d)),                       # W2
            full((DEPTH, 6, d)),                             # LN params + bo/b2
        ],
        out_specs=pl.BlockSpec((bt, d), lambda i: (i, 0)),
        compiler_params=pltpu.CompilerParams(
            dimension_semantics=("parallel",)),
    )(x, pos, wproj, w1b, w2m, vecd)
    return out[:B]                                           # (B, D)


# ---------------------------------------------------------------------------
# Pure-JAX reference (same math as the PyTorch module) for correctness checks.
# ---------------------------------------------------------------------------
def reference_forward(x, pos, ln1g, ln1b, wq, wkv, wo, bo,
                      ln2g, ln2b, w1, b1, w2, b2):
    x = x + pos
    scale = DIM_HEAD ** (-0.5)
    for l in range(DEPTH):
        h = _layernorm(x, ln1g[l], ln1b[l])
        q = h @ wq[l]
        kv = h @ wkv[l]
        k, v = kv[..., :INNER], kv[..., INNER:]
        b_, n_, _ = q.shape
        qr = q.reshape(b_, n_, HEADS, DIM_HEAD).transpose(0, 2, 1, 3)
        kr = k.reshape(b_, n_, HEADS, DIM_HEAD).transpose(0, 2, 1, 3)
        vr = v.reshape(b_, n_, HEADS, DIM_HEAD).transpose(0, 2, 1, 3)
        dots = jnp.einsum('bhid,bhjd->bhij', qr, kr) * scale
        attn = jax.nn.softmax(dots, axis=-1)
        o = jnp.einsum('bhij,bhjd->bhid', attn, vr)
        o = o.transpose(0, 2, 1, 3).reshape(b_, n_, INNER)
        x = x + (o @ wo[l] + bo[l])
        h2 = _layernorm(x, ln2g[l], ln2b[l])
        x = x + (_gelu_tanh(h2 @ w1[l] + b1[l]) @ w2[l] + b2[l])
    return x[:, 0]


# ---------------------------------------------------------------------------
# Deterministic parameter construction + run
# ---------------------------------------------------------------------------
def make_params(key):
    ks = jax.random.split(key, 16)
    f = jnp.float32
    pos  = 0.02 * jax.random.normal(ks[0], (1, SEQ, INPUT_DIM), f)
    # NOTE: cls_token exists in the PyTorch module but is dead code in forward.
    ln1g = 1.0 + 0.1 * jax.random.normal(ks[9],  (DEPTH, 1, INPUT_DIM), f)
    ln1b = 0.05 * jax.random.normal(ks[10], (DEPTH, 1, INPUT_DIM), f)
    ln2g = 1.0 + 0.1 * jax.random.normal(ks[11], (DEPTH, 1, INPUT_DIM), f)
    ln2b = 0.05 * jax.random.normal(ks[12], (DEPTH, 1, INPUT_DIM), f)
    wq  = 0.05 * jax.random.normal(ks[1], (DEPTH, INPUT_DIM, INNER), f)
    wkv = 0.05 * jax.random.normal(ks[2], (DEPTH, INPUT_DIM, 2 * INNER), f)
    wo  = 0.05 * jax.random.normal(ks[3], (DEPTH, INNER, INPUT_DIM), f)
    bo  = 0.01 * jax.random.normal(ks[4], (DEPTH, 1, INPUT_DIM), f)
    w1  = 0.05 * jax.random.normal(ks[5], (DEPTH, INPUT_DIM, MLP_DIM), f)
    b1  = 0.01 * jax.random.normal(ks[6], (DEPTH, 1, MLP_DIM), f)
    w2  = 0.05 * jax.random.normal(ks[7], (DEPTH, MLP_DIM, INPUT_DIM), f)
    b2  = 0.01 * jax.random.normal(ks[8], (DEPTH, 1, INPUT_DIM), f)
    return (pos, ln1g, ln1b, wq, wkv, wo, bo, ln2g, ln2b, w1, b1, w2, b2)


if __name__ == "__main__":
    key = jax.random.PRNGKey(0)
    kx, kx2, kp = jax.random.split(key, 3)
    # Input already carries num_patches+1 tokens (see fidelity note above).
    x = jax.random.normal(kx, (BATCH, SEQ, INPUT_DIM), jnp.float32)
    params = make_params(kp)
    ref = reference_forward(x, *params)

    # f32 MXU path (numerically faithful to the PyTorch module), one grid step.
    out_f32 = jax.block_until_ready(temporal_transformer_cls(x, *params))
    assert out_f32.shape == (BATCH, INPUT_DIM)
    assert jnp.allclose(out_f32, ref, rtol=2e-3, atol=2e-3), \
        "Pallas f32 output mismatch vs reference"

    # bf16 MXU operands (v6e/v7x recommendation), f32 accum + f32 elementwise.
    out_bf16 = jax.block_until_ready(
        temporal_transformer_cls(x, *params, matmul_dtype="bfloat16"))
    assert jnp.allclose(out_bf16, ref, rtol=2e-2, atol=2e-2), \
        "Pallas bf16 output mismatch vs reference"

    # Multi-step "parallel" grid (v7x two-TensorCore sharding path).
    x_big = jax.random.normal(kx2, (16, SEQ, INPUT_DIM), jnp.float32)
    ref_big = reference_forward(x_big, *params)
    out_big = jax.block_until_ready(
        temporal_transformer_cls(x_big, *params, b_tile=8))
    assert jnp.allclose(out_big, ref_big, rtol=2e-3, atol=2e-3), \
        "Pallas tiled-grid output mismatch vs reference"

    print("KERNEL_OK")
</pallas_src>

<mosaic_0001>
module attributes {stable_mosaic.version = 11 : i64} {
  func.func @transformer_kernel(%arg0: i32, %arg1: memref<2x8x32xf32, #tpu.memory_space<vmem>>, %arg2: memref<1x8x32xf32, #tpu.memory_space<vmem>>, %arg3: memref<2x32x192xf32, #tpu.memory_space<vmem>>, %arg4: memref<2x33x64xf32, #tpu.memory_space<vmem>>, %arg5: memref<2x64x32xf32, #tpu.memory_space<vmem>>, %arg6: memref<2x6x32xf32, #tpu.memory_space<vmem>>, %arg7: memref<2x32xf32, #tpu.memory_space<vmem>>) attributes {dimension_semantics = [#tpu.dimension_semantics<parallel>], iteration_bounds = array<i64: 1>, scalar_prefetch = 0 : i64, scratch_operands = 0 : i64, tpu.core_type = #tpu.core_type<tc>, window_params = [{transform_indices = @transform_0, window_bounds = array<i64: 2, 8, 32>}, {pipeline_mode = #tpu.pipeline_mode<synchronous>, transform_indices = @transform_1, window_bounds = array<i64: 1, 8, 32>}, {pipeline_mode = #tpu.pipeline_mode<synchronous>, transform_indices = @transform_2, window_bounds = array<i64: 2, 32, 192>}, {pipeline_mode = #tpu.pipeline_mode<synchronous>, transform_indices = @transform_3, window_bounds = array<i64: 2, 33, 64>}, {pipeline_mode = #tpu.pipeline_mode<synchronous>, transform_indices = @transform_4, window_bounds = array<i64: 2, 64, 32>}, {pipeline_mode = #tpu.pipeline_mode<synchronous>, transform_indices = @transform_5, window_bounds = array<i64: 2, 6, 32>}, {transform_indices = @transform_6, window_bounds = array<i64: 2, 32>}]} {
    %c0 = arith.constant 0 : index
    %c0_0 = arith.constant 0 : index
    %c0_1 = arith.constant 0 : index
    %0 = vector.load %arg1[%c0, %c0_0, %c0_1] : memref<2x8x32xf32, #tpu.memory_space<vmem>>, vector<2x8x32xf32>
    %c0_2 = arith.constant 0 : index
    %c0_3 = arith.constant 0 : index
    %c0_4 = arith.constant 0 : index
    %1 = vector.load %arg2[%c0_2, %c0_3, %c0_4] : memref<1x8x32xf32, #tpu.memory_space<vmem>>, vector<1x8x32xf32>
    %2 = vector.broadcast %1 : vector<1x8x32xf32> to vector<2x8x32xf32>
    %3 = arith.addf %0, %2 : vector<2x8x32xf32>
    %4 = vector.shape_cast %3 : vector<2x8x32xf32> to vector<16x32xf32>
    %c0_5 = arith.constant 0 : index
    %c0_6 = arith.constant 0 : index
    %c0_7 = arith.constant 0 : index
    %5 = vector.load %arg6[%c0_5, %c0_6, %c0_7] : memref<2x6x32xf32, #tpu.memory_space<vmem>>, vector<1x1x32xf32>
    %6 = vector.shape_cast %5 : vector<1x1x32xf32> to vector<1x32xf32>
    %c0_8 = arith.constant 0 : index
    %c1 = arith.constant 1 : index
    %c0_9 = arith.constant 0 : index
    %7 = vector.load %arg6[%c0_8, %c1, %c0_9] : memref<2x6x32xf32, #tpu.memory_space<vmem>>, vector<1x1x32xf32>
    %8 = vector.shape_cast %7 : vector<1x1x32xf32> to vector<1x32xf32>
    %cst = arith.constant dense<0.000000e+00> : vector<16xf32>
    %9 = vector.multi_reduction <add>, %4, %cst [1] : vector<16x32xf32> to vector<16xf32>
    %10 = vector.shape_cast %9 : vector<16xf32> to vector<16x1xf32>
    %cst_10 = arith.constant 3.200000e+01 : f32
    %11 = vector.broadcast %cst_10 : f32 to vector<16x1xf32>
    %12 = arith.divf %10, %11 : vector<16x1xf32>
    %13 = vector.broadcast %12 : vector<16x1xf32> to vector<16x32xf32>
    %14 = arith.subf %4, %13 : vector<16x32xf32>
    %15 = arith.mulf %14, %14 : vector<16x32xf32>
    %cst_11 = arith.constant dense<0.000000e+00> : vector<16xf32>
    %16 = vector.multi_reduction <add>, %15, %cst_11 [1] : vector<16x32xf32> to vector<16xf32>
    %17 = vector.shape_cast %16 : vector<16xf32> to vector<16x1xf32>
    %cst_12 = arith.constant 3.200000e+01 : f32
    %18 = vector.broadcast %cst_12 : f32 to vector<16x1xf32>
    %19 = arith.divf %17, %18 : vector<16x1xf32>
    %20 = vector.broadcast %12 : vector<16x1xf32> to vector<16x32xf32>
    %21 = arith.subf %4, %20 : vector<16x32xf32>
    %cst_13 = arith.constant 9.99999974E-6 : f32
    %22 = vector.broadcast %cst_13 : f32 to vector<16x1xf32>
    %23 = arith.addf %19, %22 : vector<16x1xf32>
    %24 = math.rsqrt %23 : vector<16x1xf32>
    %25 = vector.broadcast %24 : vector<16x1xf32> to vector<16x32xf32>
    %26 = arith.mulf %21, %25 : vector<16x32xf32>
    %27 = vector.broadcast %6 : vector<1x32xf32> to vector<16x32xf32>
    %28 = arith.mulf %26, %27 : vector<16x32xf32>
    %29 = vector.broadcast %8 : vector<1x32xf32> to vector<16x32xf32>
    %30 = arith.addf %28, %29 : vector<16x32xf32>
    %c0_14 = arith.constant 0 : index
    %c0_15 = arith.constant 0 : index
    %c0_16 = arith.constant 0 : index
    %31 = vector.load %arg3[%c0_14, %c0_15, %c0_16] : memref<2x32x192xf32, #tpu.memory_space<vmem>>, vector<1x32x192xf32>
    %32 = vector.shape_cast %31 : vector<1x32x192xf32> to vector<32x192xf32>
    %cst_17 = arith.constant dense<0.000000e+00> : vector<16x192xf32>
    %33 = tpu.matmul %30, %32, %cst_17 {dimension_numbers = #tpu.dot_dimension_numbers<[1], [0], [0], [1], [0, 0, 1, 1], [], []>} : vector<16x32xf32>, vector<32x192xf32>, vector<16x192xf32> -> vector<16x192xf32>
    %34 = vector.extract_strided_slice %33 {offsets = [0, 0], sizes = [16, 8], strides = [1, 1]} : vector<16x192xf32> to vector<16x8xf32>
    %35 = vector.shape_cast %34 : vector<16x8xf32> to vector<2x1x8x8xf32>
    %36 = vector.extract_strided_slice %33 {offsets = [0, 8], sizes = [16, 8], strides = [1, 1]} : vector<16x192xf32> to vector<16x8xf32>
    %37 = vector.shape_cast %36 : vector<16x8xf32> to vector<2x1x8x8xf32>
    %38 = vector.extract_strided_slice %33 {offsets = [0, 16], sizes = [16, 8], strides = [1, 1]} : vector<16x192xf32> to vector<16x8xf32>
    %39 = vector.shape_cast %38 : vector<16x8xf32> to vector<2x1x8x8xf32>
    %40 = vector.extract_strided_slice %33 {offsets = [0, 24], sizes = [16, 8], strides = [1, 1]} : vector<16x192xf32> to vector<16x8xf32>
    %41 = vector.shape_cast %40 : vector<16x8xf32> to vector<2x1x8x8xf32>
    %42 = tpu.concatenate %35, %37, %39, %41 in 1 : vector<2x1x8x8xf32>, vector<2x1x8x8xf32>, vector<2x1x8x8xf32>, vector<2x1x8x8xf32> -> vector<2x4x8x8xf32>
    %43 = vector.shape_cast %42 : vector<2x4x8x8xf32> to vector<8x8x8xf32>
    %44 = vector.extract_strided_slice %33 {offsets = [0, 32], sizes = [16, 8], strides = [1, 1]} : vector<16x192xf32> to vector<16x8xf32>
    %45 = vector.shape_cast %44 : vector<16x8xf32> to vector<2x1x8x8xf32>
    %46 = vector.extract_strided_slice %33 {offsets = [0, 40], sizes = [16, 8], strides = [1, 1]} : vector<16x192xf32> to vector<16x8xf32>
    %47 = vector.shape_cast %46 : vector<16x8xf32> to vector<2x1x8x8xf32>
    %48 = vector.extract_strided_slice %33 {offsets = [0, 48], sizes = [16, 8], strides = [1, 1]} : vector<16x192xf32> to vector<16x8xf32>
    %49 = vector.shape_cast %48 : vector<16x8xf32> to vector<2x1x8x8xf32>
    %50 = vector.extract_strided_slice %33 {offsets = [0, 56], sizes = [16, 8], strides = [1, 1]} : vector<16x192xf32> to vector<16x8xf32>
    %51 = vector.shape_cast %50 : vector<16x8xf32> to vector<2x1x8x8xf32>
    %52 = tpu.concatenate %45, %47, %49, %51 in 1 : vector<2x1x8x8xf32>, vector<2x1x8x8xf32>, vector<2x1x8x8xf32>, vector<2x1x8x8xf32> -> vector<2x4x8x8xf32>
    %53 = vector.shape_cast %52 : vector<2x4x8x8xf32> to vector<8x8x8xf32>
    %54 = vector.extract_strided_slice %33 {offsets = [0, 64], sizes = [16, 32], strides = [1, 1]} : vector<16x192xf32> to vector<16x32xf32>
    %55 = vector.shape_cast %54 : vector<16x32xf32> to vector<2x1x8x32xf32>
    %56 = vector.extract_strided_slice %33 {offsets = [0, 96], sizes = [16, 32], strides = [1, 1]} : vector<16x192xf32> to vector<16x32xf32>
    %57 = vector.shape_cast %56 : vector<16x32xf32> to vector<2x1x8x32xf32>
    %58 = vector.extract_strided_slice %33 {offsets = [0, 128], sizes = [16, 32], strides = [1, 1]} : vector<16x192xf32> to vector<16x32xf32>
    %59 = vector.shape_cast %58 : vector<16x32xf32> to vector<2x1x8x32xf32>
    %60 = vector.extract_strided_slice %33 {offsets = [0, 160], sizes = [16, 32], strides = [1, 1]} : vector<16x192xf32> to vector<16x32xf32>
    %61 = vector.shape_cast %60 : vector<16x32xf32> to vector<2x1x8x32xf32>
    %62 = tpu.concatenate %55, %57, %59, %61 in 1 : vector<2x1x8x32xf32>, vector<2x1x8x32xf32>, vector<2x1x8x32xf32>, vector<2x1x8x32xf32> -> vector<2x4x8x32xf32>
    %63 = vector.shape_cast %62 : vector<2x4x8x32xf32> to vector<8x8x32xf32>
    %cst_18 = arith.constant dense<0.000000e+00> : vector<8x8x8xf32>
    %64 = tpu.matmul %43, %53, %cst_18 {dimension_numbers = #tpu.dot_dimension_numbers<[2], [2], [1], [1], [0, 0, 0, 1, 1, 1], [0], [0]>} : vector<8x8x8xf32>, vector<8x8x8xf32>, vector<8x8x8xf32> -> vector<8x8x8xf32>
    %cst_19 = arith.constant dense<0xFF800000> : vector<8x8xf32>
    %65 = vector.multi_reduction <maximumf>, %64, %cst_19 [2] : vector<8x8x8xf32> to vector<8x8xf32>
    %66 = vector.shape_cast %65 : vector<8x8xf32> to vector<8x8x1xf32>
    %67 = vector.broadcast %66 : vector<8x8x1xf32> to vector<8x8x8xf32>
    %68 = arith.subf %64, %67 : vector<8x8x8xf32>
    %69 = math.exp %68 : vector<8x8x8xf32>
    %cst_20 = arith.constant dense<0.000000e+00> : vector<8x8xf32>
    %70 = vector.multi_reduction <add>, %69, %cst_20 [2] : vector<8x8x8xf32> to vector<8x8xf32>
    %71 = vector.shape_cast %70 : vector<8x8xf32> to vector<8x8x1xf32>
    %72 = tpu.reciprocal %71 {approx = true} : vector<8x8x1xf32> -> vector<8x8x1xf32>
    %73 = vector.broadcast %72 : vector<8x8x1xf32> to vector<8x8x8xf32>
    %74 = arith.mulf %69, %73 : vector<8x8x8xf32>
    %cst_21 = arith.constant dense<0.000000e+00> : vector<8x8x32xf32>
    %75 = tpu.matmul %74, %63, %cst_21 {dimension_numbers = #tpu.dot_dimension_numbers<[2], [1], [1], [2], [0, 0, 0, 1, 1, 2], [0], [0]>} : vector<8x8x8xf32>, vector<8x8x32xf32>, vector<8x8x32xf32> -> vector<8x8x32xf32>
    %76 = vector.shape_cast %75 : vector<8x8x32xf32> to vector<2x4x8x32xf32>
    %77 = vector.extract_strided_slice %76 {offsets = [0, 0, 0, 0], sizes = [2, 1, 8, 32], strides = [1, 1, 1, 1]} : vector<2x4x8x32xf32> to vector<2x1x8x32xf32>
    %78 = vector.shape_cast %77 : vector<2x1x8x32xf32> to vector<2x8x32xf32>
    %79 = vector.extract_strided_slice %76 {offsets = [0, 1, 0, 0], sizes = [2, 1, 8, 32], strides = [1, 1, 1, 1]} : vector<2x4x8x32xf32> to vector<2x1x8x32xf32>
    %80 = vector.shape_cast %79 : vector<2x1x8x32xf32> to vector<2x8x32xf32>
    %81 = arith.addf %78, %80 : vector<2x8x32xf32>
    %82 = vector.extract_strided_slice %76 {offsets = [0, 2, 0, 0], sizes = [2, 1, 8, 32], strides = [1, 1, 1, 1]} : vector<2x4x8x32xf32> to vector<2x1x8x32xf32>
    %83 = vector.shape_cast %82 : vector<2x1x8x32xf32> to vector<2x8x32xf32>
    %84 = arith.addf %81, %83 : vector<2x8x32xf32>
    %85 = vector.extract_strided_slice %76 {offsets = [0, 3, 0, 0], sizes = [2, 1, 8, 32], strides = [1, 1, 1, 1]} : vector<2x4x8x32xf32> to vector<2x1x8x32xf32>
    %86 = vector.shape_cast %85 : vector<2x1x8x32xf32> to vector<2x8x32xf32>
    %87 = arith.addf %84, %86 : vector<2x8x32xf32>
    %88 = vector.shape_cast %87 : vector<2x8x32xf32> to vector<16x32xf32>
    %89 = arith.addf %4, %88 : vector<16x32xf32>
    %c0_22 = arith.constant 0 : index
    %c4 = arith.constant 4 : index
    %c0_23 = arith.constant 0 : index
    %90 = vector.load %arg6[%c0_22, %c4, %c0_23] : memref<2x6x32xf32, #tpu.memory_space<vmem>>, vector<1x1x32xf32>
    %91 = vector.shape_cast %90 : vector<1x1x32xf32> to vector<1x32xf32>
    %92 = vector.broadcast %91 : vector<1x32xf32> to vector<16x32xf32>
    %93 = arith.addf %89, %92 : vector<16x32xf32>
    %c0_24 = arith.constant 0 : index
    %c2 = arith.constant 2 : index
    %c0_25 = arith.constant 0 : index
    %94 = vector.load %arg6[%c0_24, %c2, %c0_25] : memref<2x6x32xf32, #tpu.memory_space<vmem>>, vector<1x1x32xf32>
    %95 = vector.shape_cast %94 : vector<1x1x32xf32> to vector<1x32xf32>
    %c0_26 = arith.constant 0 : index
    %c3 = arith.constant 3 : index
    %c0_27 = arith.constant 0 : index
    %96 = vector.load %arg6[%c0_26, %c3, %c0_27] : memref<2x6x32xf32, #tpu.memory_space<vmem>>, vector<1x1x32xf32>
    %97 = vector.shape_cast %96 : vector<1x1x32xf32> to vector<1x32xf32>
    %cst_28 = arith.constant dense<0.000000e+00> : vector<16xf32>
    %98 = vector.multi_reduction <add>, %93, %cst_28 [1] : vector<16x32xf32> to vector<16xf32>
    %99 = vector.shape_cast %98 : vector<16xf32> to vector<16x1xf32>
    %cst_29 = arith.constant 3.200000e+01 : f32
    %100 = vector.broadcast %cst_29 : f32 to vector<16x1xf32>
    %101 = arith.divf %99, %100 : vector<16x1xf32>
    %102 = vector.broadcast %101 : vector<16x1xf32> to vector<16x32xf32>
    %103 = arith.subf %93, %102 : vector<16x32xf32>
    %104 = arith.mulf %103, %103 : vector<16x32xf32>
    %cst_30 = arith.constant dense<0.000000e+00> : vector<16xf32>
    %105 = vector.multi_reduction <add>, %104, %cst_30 [1] : vector<16x32xf32> to vector<16xf32>
    %106 = vector.shape_cast %105 : vector<16xf32> to vector<16x1xf32>
    %cst_31 = arith.constant 3.200000e+01 : f32
    %107 = vector.broadcast %cst_31 : f32 to vector<16x1xf32>
    %108 = arith.divf %106, %107 : vector<16x1xf32>
    %109 = vector.broadcast %101 : vector<16x1xf32> to vector<16x32xf32>
    %110 = arith.subf %93, %109 : vector<16x32xf32>
    %cst_32 = arith.constant 9.99999974E-6 : f32
    %111 = vector.broadcast %cst_32 : f32 to vector<16x1xf32>
    %112 = arith.addf %108, %111 : vector<16x1xf32>
    %113 = math.rsqrt %112 : vector<16x1xf32>
    %114 = vector.broadcast %113 : vector<16x1xf32> to vector<16x32xf32>
    %115 = arith.mulf %110, %114 : vector<16x32xf32>
    %116 = vector.broadcast %95 : vector<1x32xf32> to vector<16x32xf32>
    %117 = arith.mulf %115, %116 : vector<16x32xf32>
    %118 = vector.broadcast %97 : vector<1x32xf32> to vector<16x32xf32>
    %119 = arith.addf %117, %118 : vector<16x32xf32>
    %c0_33 = arith.constant 0 : index
    %c0_34 = arith.constant 0 : index
    %c0_35 = arith.constant 0 : index
    %120 = vector.load %arg4[%c0_33, %c0_34, %c0_35] : memref<2x33x64xf32, #tpu.memory_space<vmem>>, vector<1x32x64xf32>
    %121 = vector.shape_cast %120 : vector<1x32x64xf32> to vector<32x64xf32>
    %cst_36 = arith.constant dense<0.000000e+00> : vector<16x64xf32>
    %122 = tpu.matmul %119, %121, %cst_36 {dimension_numbers = #tpu.dot_dimension_numbers<[1], [0], [0], [1], [0, 0, 1, 1], [], []>} : vector<16x32xf32>, vector<32x64xf32>, vector<16x64xf32> -> vector<16x64xf32>
    %c0_37 = arith.constant 0 : index
    %c32 = arith.constant 32 : index
    %c0_38 = arith.constant 0 : index
    %123 = vector.load %arg4[%c0_37, %c32, %c0_38] : memref<2x33x64xf32, #tpu.memory_space<vmem>>, vector<1x1x64xf32>
    %124 = vector.shape_cast %123 : vector<1x1x64xf32> to vector<1x64xf32>
    %125 = vector.broadcast %124 : vector<1x64xf32> to vector<16x64xf32>
    %126 = arith.addf %122, %125 : vector<16x64xf32>
    %cst_39 = arith.constant 5.000000e-01 : f32
    %127 = vector.broadcast %cst_39 : f32 to vector<16x64xf32>
    %128 = arith.mulf %127, %126 : vector<16x64xf32>
    %129 = arith.mulf %126, %126 : vector<16x64xf32>
    %130 = arith.mulf %126, %129 : vector<16x64xf32>
    %cst_40 = arith.constant 4.471500e-02 : f32
    %131 = vector.broadcast %cst_40 : f32 to vector<16x64xf32>
    %132 = arith.mulf %131, %130 : vector<16x64xf32>
    %133 = arith.addf %126, %132 : vector<16x64xf32>
    %cst_41 = arith.constant 0.797884583 : f32
    %134 = vector.broadcast %cst_41 : f32 to vector<16x64xf32>
    %135 = arith.mulf %134, %133 : vector<16x64xf32>
    %136 = math.tanh %135 : vector<16x64xf32>
    %cst_42 = arith.constant 1.000000e+00 : f32
    %137 = vector.broadcast %cst_42 : f32 to vector<16x64xf32>
    %138 = arith.addf %137, %136 : vector<16x64xf32>
    %139 = arith.mulf %128, %138 : vector<16x64xf32>
    %c0_43 = arith.constant 0 : index
    %c0_44 = arith.constant 0 : index
    %c0_45 = arith.constant 0 : index
    %140 = vector.load %arg5[%c0_43, %c0_44, %c0_45] : memref<2x64x32xf32, #tpu.memory_space<vmem>>, vector<1x64x32xf32>
    %141 = vector.shape_cast %140 : vector<1x64x32xf32> to vector<64x32xf32>
    %cst_46 = arith.constant dense<0.000000e+00> : vector<16x32xf32>
    %142 = tpu.matmul %139, %141, %cst_46 {dimension_numbers = #tpu.dot_dimension_numbers<[1], [0], [0], [1], [0, 0, 1, 1], [], []>} : vector<16x64xf32>, vector<64x32xf32>, vector<16x32xf32> -> vector<16x32xf32>
    %143 = arith.addf %93, %142 : vector<16x32xf32>
    %c0_47 = arith.constant 0 : index
    %c5 = arith.constant 5 : index
    %c0_48 = arith.constant 0 : index
    %144 = vector.load %arg6[%c0_47, %c5, %c0_48] : memref<2x6x32xf32, #tpu.memory_space<vmem>>, vector<1x1x32xf32>
    %145 = vector.shape_cast %144 : vector<1x1x32xf32> to vector<1x32xf32>
    %146 = vector.broadcast %145 : vector<1x32xf32> to vector<16x32xf32>
    %147 = arith.addf %143, %146 : vector<16x32xf32>
    %c1_49 = arith.constant 1 : index
    %c0_50 = arith.constant 0 : index
    %c0_51 = arith.constant 0 : index
    %148 = vector.load %arg6[%c1_49, %c0_50, %c0_51] : memref<2x6x32xf32, #tpu.memory_space<vmem>>, vector<1x1x32xf32>
    %149 = vector.shape_cast %148 : vector<1x1x32xf32> to vector<1x32xf32>
    %c1_52 = arith.constant 1 : index
    %c1_53 = arith.constant 1 : index
    %c0_54 = arith.constant 0 : index
    %150 = vector.load %arg6[%c1_52, %c1_53, %c0_54] : memref<2x6x32xf32, #tpu.memory_space<vmem>>, vector<1x1x32xf32>
    %151 = vector.shape_cast %150 : vector<1x1x32xf32> to vector<1x32xf32>
    %cst_55 = arith.constant dense<0.000000e+00> : vector<16xf32>
    %152 = vector.multi_reduction <add>, %147, %cst_55 [1] : vector<16x32xf32> to vector<16xf32>
    %153 = vector.shape_cast %152 : vector<16xf32> to vector<16x1xf32>
    %cst_56 = arith.constant 3.200000e+01 : f32
    %154 = vector.broadcast %cst_56 : f32 to vector<16x1xf32>
    %155 = arith.divf %153, %154 : vector<16x1xf32>
    %156 = vector.broadcast %155 : vector<16x1xf32> to vector<16x32xf32>
    %157 = arith.subf %147, %156 : vector<16x32xf32>
    %158 = arith.mulf %157, %157 : vector<16x32xf32>
    %cst_57 = arith.constant dense<0.000000e+00> : vector<16xf32>
    %159 = vector.multi_reduction <add>, %158, %cst_57 [1] : vector<16x32xf32> to vector<16xf32>
    %160 = vector.shape_cast %159 : vector<16xf32> to vector<16x1xf32>
    %cst_58 = arith.constant 3.200000e+01 : f32
    %161 = vector.broadcast %cst_58 : f32 to vector<16x1xf32>
    %162 = arith.divf %160, %161 : vector<16x1xf32>
    %163 = vector.broadcast %155 : vector<16x1xf32> to vector<16x32xf32>
    %164 = arith.subf %147, %163 : vector<16x32xf32>
    %cst_59 = arith.constant 9.99999974E-6 : f32
    %165 = vector.broadcast %cst_59 : f32 to vector<16x1xf32>
    %166 = arith.addf %162, %165 : vector<16x1xf32>
    %167 = math.rsqrt %166 : vector<16x1xf32>
    %168 = vector.broadcast %167 : vector<16x1xf32> to vector<16x32xf32>
    %169 = arith.mulf %164, %168 : vector<16x32xf32>
    %170 = vector.broadcast %149 : vector<1x32xf32> to vector<16x32xf32>
    %171 = arith.mulf %169, %170 : vector<16x32xf32>
    %172 = vector.broadcast %151 : vector<1x32xf32> to vector<16x32xf32>
    %173 = arith.addf %171, %172 : vector<16x32xf32>
    %c1_60 = arith.constant 1 : index
    %c0_61 = arith.constant 0 : index
    %c0_62 = arith.constant 0 : index
    %174 = vector.load %arg3[%c1_60, %c0_61, %c0_62] : memref<2x32x192xf32, #tpu.memory_space<vmem>>, vector<1x32x192xf32>
    %175 = vector.shape_cast %174 : vector<1x32x192xf32> to vector<32x192xf32>
    %cst_63 = arith.constant dense<0.000000e+00> : vector<16x192xf32>
    %176 = tpu.matmul %173, %175, %cst_63 {dimension_numbers = #tpu.dot_dimension_numbers<[1], [0], [0], [1], [0, 0, 1, 1], [], []>} : vector<16x32xf32>, vector<32x192xf32>, vector<16x192xf32> -> vector<16x192xf32>
    %177 = vector.extract_strided_slice %176 {offsets = [0, 0], sizes = [16, 8], strides = [1, 1]} : vector<16x192xf32> to vector<16x8xf32>
    %178 = vector.shape_cast %177 : vector<16x8xf32> to vector<2x1x8x8xf32>
    %179 = vector.extract_strided_slice %176 {offsets = [0, 8], sizes = [16, 8], strides = [1, 1]} : vector<16x192xf32> to vector<16x8xf32>
    %180 = vector.shape_cast %179 : vector<16x8xf32> to vector<2x1x8x8xf32>
    %181 = vector.extract_strided_slice %176 {offsets = [0, 16], sizes = [16, 8], strides = [1, 1]} : vector<16x192xf32> to vector<16x8xf32>
    %182 = vector.shape_cast %181 : vector<16x8xf32> to vector<2x1x8x8xf32>
    %183 = vector.extract_strided_slice %176 {offsets = [0, 24], sizes = [16, 8], strides = [1, 1]} : vector<16x192xf32> to vector<16x8xf32>
    %184 = vector.shape_cast %183 : vector<16x8xf32> to vector<2x1x8x8xf32>
    %185 = tpu.concatenate %178, %180, %182, %184 in 1 : vector<2x1x8x8xf32>, vector<2x1x8x8xf32>, vector<2x1x8x8xf32>, vector<2x1x8x8xf32> -> vector<2x4x8x8xf32>
    %186 = vector.shape_cast %185 : vector<2x4x8x8xf32> to vector<8x8x8xf32>
    %187 = vector.extract_strided_slice %176 {offsets = [0, 32], sizes = [16, 8], strides = [1, 1]} : vector<16x192xf32> to vector<16x8xf32>
    %188 = vector.shape_cast %187 : vector<16x8xf32> to vector<2x1x8x8xf32>
    %189 = vector.extract_strided_slice %176 {offsets = [0, 40], sizes = [16, 8], strides = [1, 1]} : vector<16x192xf32> to vector<16x8xf32>
    %190 = vector.shape_cast %189 : vector<16x8xf32> to vector<2x1x8x8xf32>
    %191 = vector.extract_strided_slice %176 {offsets = [0, 48], sizes = [16, 8], strides = [1, 1]} : vector<16x192xf32> to vector<16x8xf32>
    %192 = vector.shape_cast %191 : vector<16x8xf32> to vector<2x1x8x8xf32>
    %193 = vector.extract_strided_slice %176 {offsets = [0, 56], sizes = [16, 8], strides = [1, 1]} : vector<16x192xf32> to vector<16x8xf32>
    %194 = vector.shape_cast %193 : vector<16x8xf32> to vector<2x1x8x8xf32>
    %195 = tpu.concatenate %188, %190, %192, %194 in 1 : vector<2x1x8x8xf32>, vector<2x1x8x8xf32>, vector<2x1x8x8xf32>, vector<2x1x8x8xf32> -> vector<2x4x8x8xf32>
    %196 = vector.shape_cast %195 : vector<2x4x8x8xf32> to vector<8x8x8xf32>
    %197 = vector.extract_strided_slice %176 {offsets = [0, 64], sizes = [16, 32], strides = [1, 1]} : vector<16x192xf32> to vector<16x32xf32>
    %198 = vector.shape_cast %197 : vector<16x32xf32> to vector<2x1x8x32xf32>
    %199 = vector.extract_strided_slice %176 {offsets = [0, 96], sizes = [16, 32], strides = [1, 1]} : vector<16x192xf32> to vector<16x32xf32>
    %200 = vector.shape_cast %199 : vector<16x32xf32> to vector<2x1x8x32xf32>
    %201 = vector.extract_strided_slice %176 {offsets = [0, 128], sizes = [16, 32], strides = [1, 1]} : vector<16x192xf32> to vector<16x32xf32>
    %202 = vector.shape_cast %201 : vector<16x32xf32> to vector<2x1x8x32xf32>
    %203 = vector.extract_strided_slice %176 {offsets = [0, 160], sizes = [16, 32], strides = [1, 1]} : vector<16x192xf32> to vector<16x32xf32>
    %204 = vector.shape_cast %203 : vector<16x32xf32> to vector<2x1x8x32xf32>
    %205 = tpu.concatenate %198, %200, %202, %204 in 1 : vector<2x1x8x32xf32>, vector<2x1x8x32xf32>, vector<2x1x8x32xf32>, vector<2x1x8x32xf32> -> vector<2x4x8x32xf32>
    %206 = vector.shape_cast %205 : vector<2x4x8x32xf32> to vector<8x8x32xf32>
    %cst_64 = arith.constant dense<0.000000e+00> : vector<8x8x8xf32>
    %207 = tpu.matmul %186, %196, %cst_64 {dimension_numbers = #tpu.dot_dimension_numbers<[2], [2], [1], [1], [0, 0, 0, 1, 1, 1], [0], [0]>} : vector<8x8x8xf32>, vector<8x8x8xf32>, vector<8x8x8xf32> -> vector<8x8x8xf32>
    %cst_65 = arith.constant dense<0xFF800000> : vector<8x8xf32>
    %208 = vector.multi_reduction <maximumf>, %207, %cst_65 [2] : vector<8x8x8xf32> to vector<8x8xf32>
    %209 = vector.shape_cast %208 : vector<8x8xf32> to vector<8x8x1xf32>
    %210 = vector.broadcast %209 : vector<8x8x1xf32> to vector<8x8x8xf32>
    %211 = arith.subf %207, %210 : vector<8x8x8xf32>
    %212 = math.exp %211 : vector<8x8x8xf32>
    %cst_66 = arith.constant dense<0.000000e+00> : vector<8x8xf32>
    %213 = vector.multi_reduction <add>, %212, %cst_66 [2] : vector<8x8x8xf32> to vector<8x8xf32>
    %214 = vector.shape_cast %213 : vector<8x8xf32> to vector<8x8x1xf32>
    %215 = tpu.reciprocal %214 {approx = true} : vector<8x8x1xf32> -> vector<8x8x1xf32>
    %216 = vector.broadcast %215 : vector<8x8x1xf32> to vector<8x8x8xf32>
    %217 = arith.mulf %212, %216 : vector<8x8x8xf32>
    %cst_67 = arith.constant dense<0.000000e+00> : vector<8x8x32xf32>
    %218 = tpu.matmul %217, %206, %cst_67 {dimension_numbers = #tpu.dot_dimension_numbers<[2], [1], [1], [2], [0, 0, 0, 1, 1, 2], [0], [0]>} : vector<8x8x8xf32>, vector<8x8x32xf32>, vector<8x8x32xf32> -> vector<8x8x32xf32>
    %219 = vector.shape_cast %218 : vector<8x8x32xf32> to vector<2x4x8x32xf32>
    %220 = vector.extract_strided_slice %219 {offsets = [0, 0, 0, 0], sizes = [2, 1, 8, 32], strides = [1, 1, 1, 1]} : vector<2x4x8x32xf32> to vector<2x1x8x32xf32>
    %221 = vector.shape_cast %220 : vector<2x1x8x32xf32> to vector<2x8x32xf32>
    %222 = vector.extract_strided_slice %219 {offsets = [0, 1, 0, 0], sizes = [2, 1, 8, 32], strides = [1, 1, 1, 1]} : vector<2x4x8x32xf32> to vector<2x1x8x32xf32>
    %223 = vector.shape_cast %222 : vector<2x1x8x32xf32> to vector<2x8x32xf32>
    %224 = arith.addf %221, %223 : vector<2x8x32xf32>
    %225 = vector.extract_strided_slice %219 {offsets = [0, 2, 0, 0], sizes = [2, 1, 8, 32], strides = [1, 1, 1, 1]} : vector<2x4x8x32xf32> to vector<2x1x8x32xf32>
    %226 = vector.shape_cast %225 : vector<2x1x8x32xf32> to vector<2x8x32xf32>
    %227 = arith.addf %224, %226 : vector<2x8x32xf32>
    %228 = vector.extract_strided_slice %219 {offsets = [0, 3, 0, 0], sizes = [2, 1, 8, 32], strides = [1, 1, 1, 1]} : vector<2x4x8x32xf32> to vector<2x1x8x32xf32>
    %229 = vector.shape_cast %228 : vector<2x1x8x32xf32> to vector<2x8x32xf32>
    %230 = arith.addf %227, %229 : vector<2x8x32xf32>
    %231 = vector.shape_cast %230 : vector<2x8x32xf32> to vector<16x32xf32>
    %232 = arith.addf %147, %231 : vector<16x32xf32>
    %c1_68 = arith.constant 1 : index
    %c4_69 = arith.constant 4 : index
    %c0_70 = arith.constant 0 : index
    %233 = vector.load %arg6[%c1_68, %c4_69, %c0_70] : memref<2x6x32xf32, #tpu.memory_space<vmem>>, vector<1x1x32xf32>
    %234 = vector.shape_cast %233 : vector<1x1x32xf32> to vector<1x32xf32>
    %235 = vector.broadcast %234 : vector<1x32xf32> to vector<16x32xf32>
    %236 = arith.addf %232, %235 : vector<16x32xf32>
    %c1_71 = arith.constant 1 : index
    %c2_72 = arith.constant 2 : index
    %c0_73 = arith.constant 0 : index
    %237 = vector.load %arg6[%c1_71, %c2_72, %c0_73] : memref<2x6x32xf32, #tpu.memory_space<vmem>>, vector<1x1x32xf32>
    %238 = vector.shape_cast %237 : vector<1x1x32xf32> to vector<1x32xf32>
    %c1_74 = arith.constant 1 : index
    %c3_75 = arith.constant 3 : index
    %c0_76 = arith.constant 0 : index
    %239 = vector.load %arg6[%c1_74, %c3_75, %c0_76] : memref<2x6x32xf32, #tpu.memory_space<vmem>>, vector<1x1x32xf32>
    %240 = vector.shape_cast %239 : vector<1x1x32xf32> to vector<1x32xf32>
    %cst_77 = arith.constant dense<0.000000e+00> : vector<16xf32>
    %241 = vector.multi_reduction <add>, %236, %cst_77 [1] : vector<16x32xf32> to vector<16xf32>
    %242 = vector.shape_cast %241 : vector<16xf32> to vector<16x1xf32>
    %cst_78 = arith.constant 3.200000e+01 : f32
    %243 = vector.broadcast %cst_78 : f32 to vector<16x1xf32>
    %244 = arith.divf %242, %243 : vector<16x1xf32>
    %245 = vector.broadcast %244 : vector<16x1xf32> to vector<16x32xf32>
    %246 = arith.subf %236, %245 : vector<16x32xf32>
    %247 = arith.mulf %246, %246 : vector<16x32xf32>
    %cst_79 = arith.constant dense<0.000000e+00> : vector<16xf32>
    %248 = vector.multi_reduction <add>, %247, %cst_79 [1] : vector<16x32xf32> to vector<16xf32>
    %249 = vector.shape_cast %248 : vector<16xf32> to vector<16x1xf32>
    %cst_80 = arith.constant 3.200000e+01 : f32
    %250 = vector.broadcast %cst_80 : f32 to vector<16x1xf32>
    %251 = arith.divf %249, %250 : vector<16x1xf32>
    %252 = vector.broadcast %244 : vector<16x1xf32> to vector<16x32xf32>
    %253 = arith.subf %236, %252 : vector<16x32xf32>
    %cst_81 = arith.constant 9.99999974E-6 : f32
    %254 = vector.broadcast %cst_81 : f32 to vector<16x1xf32>
    %255 = arith.addf %251, %254 : vector<16x1xf32>
    %256 = math.rsqrt %255 : vector<16x1xf32>
    %257 = vector.broadcast %256 : vector<16x1xf32> to vector<16x32xf32>
    %258 = arith.mulf %253, %257 : vector<16x32xf32>
    %259 = vector.broadcast %238 : vector<1x32xf32> to vector<16x32xf32>
    %260 = arith.mulf %258, %259 : vector<16x32xf32>
    %261 = vector.broadcast %240 : vector<1x32xf32> to vector<16x32xf32>
    %262 = arith.addf %260, %261 : vector<16x32xf32>
    %c1_82 = arith.constant 1 : index
    %c0_83 = arith.constant 0 : index
    %c0_84 = arith.constant 0 : index
    %263 = vector.load %arg4[%c1_82, %c0_83, %c0_84] : memref<2x33x64xf32, #tpu.memory_space<vmem>>, vector<1x32x64xf32>
    %264 = vector.shape_cast %263 : vector<1x32x64xf32> to vector<32x64xf32>
    %cst_85 = arith.constant dense<0.000000e+00> : vector<16x64xf32>
    %265 = tpu.matmul %262, %264, %cst_85 {dimension_numbers = #tpu.dot_dimension_numbers<[1], [0], [0], [1], [0, 0, 1, 1], [], []>} : vector<16x32xf32>, vector<32x64xf32>, vector<16x64xf32> -> vector<16x64xf32>
    %c1_86 = arith.constant 1 : index
    %c32_87 = arith.constant 32 : index
    %c0_88 = arith.constant 0 : index
    %266 = vector.load %arg4[%c1_86, %c32_87, %c0_88] : memref<2x33x64xf32, #tpu.memory_space<vmem>>, vector<1x1x64xf32>
    %267 = vector.shape_cast %266 : vector<1x1x64xf32> to vector<1x64xf32>
    %268 = vector.broadcast %267 : vector<1x64xf32> to vector<16x64xf32>
    %269 = arith.addf %265, %268 : vector<16x64xf32>
    %cst_89 = arith.constant 5.000000e-01 : f32
    %270 = vector.broadcast %cst_89 : f32 to vector<16x64xf32>
    %271 = arith.mulf %270, %269 : vector<16x64xf32>
    %272 = arith.mulf %269, %269 : vector<16x64xf32>
    %273 = arith.mulf %269, %272 : vector<16x64xf32>
    %cst_90 = arith.constant 4.471500e-02 : f32
    %274 = vector.broadcast %cst_90 : f32 to vector<16x64xf32>
    %275 = arith.mulf %274, %273 : vector<16x64xf32>
    %276 = arith.addf %269, %275 : vector<16x64xf32>
    %cst_91 = arith.constant 0.797884583 : f32
    %277 = vector.broadcast %cst_91 : f32 to vector<16x64xf32>
    %278 = arith.mulf %277, %276 : vector<16x64xf32>
    %279 = math.tanh %278 : vector<16x64xf32>
    %cst_92 = arith.constant 1.000000e+00 : f32
    %280 = vector.broadcast %cst_92 : f32 to vector<16x64xf32>
    %281 = arith.addf %280, %279 : vector<16x64xf32>
    %282 = arith.mulf %271, %281 : vector<16x64xf32>
    %c1_93 = arith.constant 1 : index
    %c0_94 = arith.constant 0 : index
    %c0_95 = arith.constant 0 : index
    %283 = vector.load %arg5[%c1_93, %c0_94, %c0_95] : memref<2x64x32xf32, #tpu.memory_space<vmem>>, vector<1x64x32xf32>
    %284 = vector.shape_cast %283 : vector<1x64x32xf32> to vector<64x32xf32>
    %cst_96 = arith.constant dense<0.000000e+00> : vector<16x32xf32>
    %285 = tpu.matmul %282, %284, %cst_96 {dimension_numbers = #tpu.dot_dimension_numbers<[1], [0], [0], [1], [0, 0, 1, 1], [], []>} : vector<16x64xf32>, vector<64x32xf32>, vector<16x32xf32> -> vector<16x32xf32>
    %286 = arith.addf %236, %285 : vector<16x32xf32>
    %c1_97 = arith.constant 1 : index
    %c5_98 = arith.constant 5 : index
    %c0_99 = arith.constant 0 : index
    %287 = vector.load %arg6[%c1_97, %c5_98, %c0_99] : memref<2x6x32xf32, #tpu.memory_space<vmem>>, vector<1x1x32xf32>
    %288 = vector.shape_cast %287 : vector<1x1x32xf32> to vector<1x32xf32>
    %289 = vector.broadcast %288 : vector<1x32xf32> to vector<16x32xf32>
    %290 = arith.addf %286, %289 : vector<16x32xf32>
    %291 = vector.shape_cast %290 : vector<16x32xf32> to vector<2x8x32xf32>
    %292 = vector.extract_strided_slice %291 {offsets = [0, 0, 0], sizes = [2, 1, 32], strides = [1, 1, 1]} : vector<2x8x32xf32> to vector<2x1x32xf32>
    %293 = vector.shape_cast %292 : vector<2x1x32xf32> to vector<2x32xf32>
    %c0_100 = arith.constant 0 : index
    %c0_101 = arith.constant 0 : index
    %294 = vector.load %arg7[%c0_100, %c0_101] : memref<2x32xf32, #tpu.memory_space<vmem>>, vector<2x32xf32>
    tpu.vector_store %arg7[%c0_100, %c0_101], %293 {strides = array<i32>} : memref<2x32xf32, #tpu.memory_space<vmem>>, vector<2x32xf32>,
    return
  }
  func.func @transform_0(%arg0: i32) -> (i32, i32, i32) {
    %c0_i32 = arith.constant 0 : i32
    %c0_i32_0 = arith.constant 0 : i32
    %c0_i32_1 = arith.constant 0 : i32
    return %arg0, %c0_i32, %c0_i32_0 : i32, i32, i32
  }
  func.func @transform_1(%arg0: i32) -> (i32, i32, i32) {
    %c0_i32 = arith.constant 0 : i32
    %c0_i32_0 = arith.constant 0 : i32
    %c0_i32_1 = arith.constant 0 : i32
    %c0_i32_2 = arith.constant 0 : i32
    return %c0_i32, %c0_i32_0, %c0_i32_1 : i32, i32, i32
  }
  func.func @transform_2(%arg0: i32) -> (i32, i32, i32) {
    %c0_i32 = arith.constant 0 : i32
    %c0_i32_0 = arith.constant 0 : i32
    %c0_i32_1 = arith.constant 0 : i32
    %c0_i32_2 = arith.constant 0 : i32
    return %c0_i32, %c0_i32_0, %c0_i32_1 : i32, i32, i32
  }
  func.func @transform_3(%arg0: i32) -> (i32, i32, i32) {
    %c0_i32 = arith.constant 0 : i32
    %c0_i32_0 = arith.constant 0 : i32
    %c0_i32_1 = arith.constant 0 : i32
    %c0_i32_2 = arith.constant 0 : i32
    return %c0_i32, %c0_i32_0, %c0_i32_1 : i32, i32, i32
  }
  func.func @transform_4(%arg0: i32) -> (i32, i32, i32) {
    %c0_i32 = arith.constant 0 : i32
    %c0_i32_0 = arith.constant 0 : i32
    %c0_i32_1 = arith.constant 0 : i32
    %c0_i32_2 = arith.constant 0 : i32
    return %c0_i32, %c0_i32_0, %c0_i32_1 : i32, i32, i32
  }
  func.func @transform_5(%arg0: i32) -> (i32, i32, i32) {
    %c0_i32 = arith.constant 0 : i32
    %c0_i32_0 = arith.constant 0 : i32
    %c0_i32_1 = arith.constant 0 : i32
    %c0_i32_2 = arith.constant 0 : i32
    return %c0_i32, %c0_i32_0, %c0_i32_1 : i32, i32, i32
  }
  func.func @transform_6(%arg0: i32) -> (i32, i32) {
    %c0_i32 = arith.constant 0 : i32
    %c0_i32_0 = arith.constant 0 : i32
    return %arg0, %c0_i32 : i32, i32
  }
}

</mosaic_0001>

<bundles_post_ra>
// kernel: temporal_transformer_cls.1
= control target key start
LH: loop header
LB: loop body
LE: loop exit
PB: predicated region body
PF: predicated region fallthrough
CT: control target
= control target key end

     0   :  { %vm31_vm0 = vcmask 261120   ;;  %s4744_s0 = inlined_call_operand.vmem [shape: f32[2,8,32], index: 0, kind: input, shape index: {}]   ;;  %s4745_s1 = inlined_call_operand.vmem [shape: f32[1,8,32], index: 1, kind: input, shape index: {}]   ;;  %s4746_s2 = inlined_call_operand.vmem [shape: f32[2,32,192], index: 2, kind: input, shape index: {}]   ;;  %s4747_s3 = inlined_call_operand.vmem [shape: f32[2,33,64], index: 3, kind: input, shape index: {}]   ;;  %s4748_s4 = inlined_call_operand.vmem [shape: f32[2,64,32], index: 4, kind: input, shape index: {}]   ;;  %s4749_s5 = inlined_call_operand.vmem [shape: f32[2,6,32], index: 5, kind: input, shape index: {}]   ;;  %s4750_s6 = inlined_call_operand.hbm [shape: f32[2,32], index: 6, kind: output, shape index: {}]  }
   0x1   :  { %v24_v0 = vld [vmem:[%s4744_s0] sm:$0xff]  ;;  %v25_v2 = vld [vmem:[%s4744_s0 + $0x8] sm:$0xff] }
   0x2   :  { %v26_v1 = vld [vmem:[%s4745_s1] sm:$0xff] }
   0x3   :  { %v4154_v3 = vadd.f32 %v26_v1, %v24_v0  ;;  %v4156_v4 = vadd.f32 %v26_v1, %v25_v2 }
   0x4   :  { %11 = vsyncpa [#allocation3], 0  ;;  %v72_v17 = vld [vmem:[%s4746_s2 + $0x8] sm:$0xff]  ;;  %v74_v18 = vld [vmem:[%s4746_s2 + $0x18] sm:$0xff]  ;;  %v4101_v24 = vmov 0.0   ;;  %vm4102_vm1 = vmmov 0  }
   0x5   :  { %v32_v5 = vsel %vm31_vm0, %v4154_v3, 0.0  ;;  %v35_v6 = vsel %vm31_vm0, %v4156_v4, 0.0  ;;  %v71_v19 = vld [vmem:[%s4746_s2] sm:$0xff]  ;;  %v3916_v20 = vpack.c.bf16 %v74_v18, %v72_v17  ;;  %v73_v21 = vld [vmem:[%s4746_s2 + $0x10] sm:$0xff]  ;;  %v76_v22 = vld [vmem:[%s4746_s2 + $0x28] sm:$0xff]  ;;  %149 = vmatprep.mubr.f32.mxu0 %v4101_v24  ;;  %3701 = vmatprep.subr.mxu1 %v4101_v24  ;;  %s4103_s21 = smov 120  }
   0x6   :  { %33 = vadd.xlane.f32.xlu0 %v32_v5  ;;  %v78_v23 = vld [vmem:[%s4746_s2 + $0x38] sm:$0xff]  ;;  %v3918_v25 = vpack.c.bf16 %v73_v21, %v71_v19  ;;  %v75_v27 = vld [vmem:[%s4746_s2 + $0x20] sm:$0xff]  ;;  %v77_v28 = vld [vmem:[%s4746_s2 + $0x30] sm:$0xff]  ;;  %3703 = vmatprep.mubr.msk.f32.mxu1 %vm4102_vm1, %v4101_v24  ;;  %s4104_s22 = smov 112   ;;  %s4105_s23 = smov 104   ;;  %vm190_vm2 = vcmask 64512  }
   0x7   :  { %v3920_v26 = vpack.c.bf16 %v78_v23, %v76_v22  ;;  %3917 = vmatprep.subr.bf16.mxu0 %v3916_v20  ;;  %v3922_v29 = vpack.c.bf16 %v77_v28, %v75_v27  ;;  %v3499_v37 = vld [vmem:[%s4749_s5] ss:$0 sm:$0xff]  ;;  %v3500_v39 = vld [vmem:[%s4749_s5 + $0x1] ss:$0 sm:$0xff]  ;;  %s4106_s24 = smov 96   ;;  %s4107_s25 = smov 32  }
   0x8   :  { %3919 = vmatpush1.bf16.msra.mxu0 %v3918_v25  ;;  %s4108_s26 = smov 64   ;;  %vm1662_vm3 = vcmask 523264   ;;  %vm3480_vm4 = vcmask 1041409   ;;  %vm3483_vm5 = vcmask 254976  }
   0x9   :  { %3921 = vmatprep.subr.bf16.mxu0 %v3920_v26 }
   0xa   :  { %36 = vadd.xlane.f32.xlu0 %v35_v6 }
   0xc   :  { %3923 = vmatpush1.bf16.msra.mxu0 %v3922_v29 }
   0xd   :  { %3696 = vmatprep.subr.mxu0 %v4101_v24 }
  0x93   :  { %v34_v7 = vpop.xlane.xlu0 %33 }
  0x94   :  { %v39_v8 = vmul.f32 0.03125, %v34_v7 }
  0x96   :  { %v41_v9 = vsub.f32 %v4154_v3, %v39_v8 }
  0x97   :  { %v37_v10 = vpop.xlane.xlu0 %36 }
  0x98   :  { %v40_v11 = vmul.f32 0.03125, %v37_v10  ;;  %v43_v12 = vmul.f32 %v41_v9, %v41_v9 }
  0x9a   :  { %v42_v13 = vsub.f32 %v4156_v4, %v40_v11  ;;  %v45_v14 = vsel %vm31_vm0, %v43_v12, 0.0 }
  0x9b   :  { %46 = vadd.xlane.f32.xlu1 %v45_v14 }
  0x9c   :  { %v44_v15 = vmul.f32 %v42_v13, %v42_v13 }
  0x9e   :  { %v48_v16 = vsel %vm31_vm0, %v44_v15, 0.0 }
  0x9f   :  { %49 = vadd.xlane.f32.xlu1 %v48_v16 }
 0x128   :  { %v47_v30 = vpop.xlane.xlu1 %46 }
 0x129   :  { %v51_v31 = vmul.f32 0.03125, %v47_v30 }
 0x12b   :  { %v53_v32 = vadd.f32 1e-05, %v51_v31 }
 0x12c   :  { %v50_v33 = vpop.xlane.xlu1 %49 }
 0x12d   :  { %3989 = vrsqrt.f32 %v53_v32  ;;  %v52_v34 = vmul.f32 0.03125, %v50_v33 }
 0x12f   :  { %v54_v35 = vadd.f32 1e-05, %v52_v34 }
 0x131   :  { %3991 = vrsqrt.f32 %v54_v35 }
 0x137   :  { %v3990_v36 = vpop.eup %3989 }
 0x138   :  { %v57_v38 = vmul.f32 %v3990_v36, %v41_v9 }
 0x13a   :  { %v63_v40 = vmul.f32 %v3499_v37, %v57_v38 }
 0x13b   :  { %v3992_v41 = vpop.eup %3991 }
 0x13c   :  { %v69_v42 = vadd.f32 %v3500_v39, %v63_v40  ;;  %v58_v43 = vmul.f32 %v3992_v41, %v42_v13 }
 0x13e   :  { %3501 = vmatmul.mubr.msk.f32.vlgmr.msra.gmra.mrb[0].mxu0 %vm31_vm0, %v69_v42  ;;  %v64_v44 = vmul.f32 %v3499_v37, %v58_v43 }
 0x13f   :  { %155 = vmatprep.mubr.f32.mxu0 %v4101_v24 }
 0x140   :  { %v70_v45 = vadd.f32 %v3500_v39, %v64_v44 }
 0x142   :  { %3502 = vmatmul.mubr.msk.f32.gmra.mrb[2].mxu0 %vm31_vm0, %v70_v45 }
 0x143   :  { %3698 = vmatprep.mubr.msk.f32.mxu0 %vm4102_vm1, %v4101_v24 }
 0x211   :  { %v4206_v46 = vpop.f32.mrb[0].mxu0 }
 0x212   :  { %164 = vrot.lane.b32.xlu0 %v4206_v46, %s4103_s21  ;;  %v4210_v47 = vpop.f32.mrb[1].mxu0  ;;  %168 = vrot.lane.b32.xlu1 %v4206_v46, %s4104_s22 }
 0x215   :  { %v4214_v48 = vpop.f32.mrb[2].mxu0 }
 0x216   :  { %172 = vrot.lane.b32.xlu1 %v4206_v46, %s4105_s23  ;;  %170 = vrot.lane.b32.xlu0 %v4214_v48, %s4104_s22  ;;  %v4220_v49 = vpop.f32.mrb[3].mxu0 }
 0x21a   :  { %176 = vrot.lane.b32.xlu0 %v4206_v46, %s4106_s24  ;;  %166 = vrot.lane.b32.xlu1 %v4214_v48, %s4103_s21 }
 0x21e   :  { %174 = vrot.lane.b32.xlu1 %v4214_v48, %s4105_s23 }
 0x284   :  { %v169_v50 = vpop.permute.xlu1 %168  ;;  %v165_v51 = vpop.permute.xlu0 %164 }
 0x285   :  { %341 = vrot.lane.b32.xlu0 %v169_v50, %s4106_s24  ;;  %265 = vrot.lane.b32.xlu1 %v165_v51, %s4106_s24 }
 0x288   :  { %v173_v52 = vpop.permute.xlu1 %172  ;;  %v171_v53 = vpop.permute.xlu0 %170 }
 0x289   :  { %178 = vrot.lane.b32.xlu0 %v4214_v48, %s4106_s24  ;;  %417 = vrot.lane.b32.xlu1 %v173_v52, %s4106_s24 }
 0x28c   :  { %v167_v54 = vpop.permute.xlu1 %166  ;;  %v4233_v55 = vpop.permute.xlu0 %176 }
 0x28d   :  { %567 = vrot.lane.b32.xlu1 %v167_v54, %s4106_s24  ;;  %643 = vrot.lane.b32.xlu0 %v171_v53, %s4106_s24 }
 0x28e   :  { %3697 = vmatpush3.xpose.msk.msra.mxu0 %vm190_vm2, %v4233_v55 }
 0x28f   :  { %3711 = vmatprep.subr.mxu0 %v4101_v24 }
 0x290   :  { %v175_v56 = vpop.permute.xlu1 %174 }
 0x291   :  { %3699 = vmatmul.mubr.msk.f32.vlgmr.msra.gmra.mrb[4].mxu0 %vm190_vm2, %v4206_v46  ;;  %719 = vrot.lane.b32.xlu1 %v175_v56, %s4106_s24 }
 0x292   :  { %3713 = vmatprep.mubr.msk.f32.mxu0 %vm4102_vm1, %v4101_v24 }
 0x2f7   :  { %v266_v57 = vpop.permute.xlu1 %265  ;;  %v342_v58 = vpop.permute.xlu0 %341 }
 0x2f8   :  { %3702 = vmatpush3.xpose.msk.msra.mxu1 %vm190_vm2, %v266_v57 }
 0x2f9   :  { %3706 = vmatprep.subr.mxu1 %v4101_v24 }
 0x2fb   :  { %3704 = vmatmul.mubr.msk.f32.vlgmr.msra.gmra.mrb[0].mxu1 %vm190_vm2, %v165_v51  ;;  %v418_v59 = vpop.permute.xlu1 %417  ;;  %v4250_v60 = vpop.permute.xlu0 %178 }
 0x2fc   :  { %3707 = vmatpush3.xpose.msk.msra.mxu1 %vm190_vm2, %v342_v58  ;;  %3712 = vmatpush3.xpose.msk.msra.mxu0 %vm190_vm2, %v418_v59 }
 0x2fd   :  { %3708 = vmatprep.mubr.msk.f32.mxu1 %vm4102_vm1, %v4101_v24  ;;  %3716 = vmatprep.subr.mxu1 %v4101_v24 }
 0x2fe   :  { %3721 = vmatprep.subr.mxu0 %v4101_v24 }
 0x2ff   :  { %v568_v61 = vpop.permute.xlu1 %567  ;;  %3709 = vmatmul.mubr.msk.f32.vlgmr.msra.gmra.mrb[2].mxu1 %vm190_vm2, %v169_v50  ;;  %3714 = vmatmul.mubr.msk.f32.vlgmr.msra.gmra.mrb[6].mxu0 %vm190_vm2, %v173_v52  ;;  %v644_v62 = vpop.permute.xlu0 %643 }
 0x300   :  { %3717 = vmatpush3.xpose.msk.msra.mxu1 %vm190_vm2, %v4250_v60  ;;  %3722 = vmatpush3.xpose.msk.msra.mxu0 %vm190_vm2, %v568_v61 }
 0x301   :  { %3718 = vmatprep.mubr.msk.f32.mxu1 %vm4102_vm1, %v4101_v24  ;;  %3723 = vmatprep.mubr.msk.f32.mxu0 %vm4102_vm1, %v4101_v24 }
 0x302   :  { %3726 = vmatprep.subr.mxu1 %v4101_v24  ;;  %3731 = vmatprep.subr.mxu0 %v4101_v24 }
 0x303   :  { %v720_v63 = vpop.permute.xlu1 %719  ;;  %3719 = vmatmul.mubr.msk.f32.vlgmr.msra.gmra.mrb[4].mxu1 %vm190_vm2, %v4214_v48  ;;  %3724 = vmatmul.mubr.msk.f32.vlgmr.msra.gmra.mrb[8].mxu0 %vm190_vm2, %v167_v54 }
 0x304   :  { %3727 = vmatpush3.xpose.msk.msra.mxu1 %vm190_vm2, %v644_v62  ;;  %3732 = vmatpush3.xpose.msk.msra.mxu0 %vm190_vm2, %v720_v63 }
 0x305   :  { %3728 = vmatprep.mubr.msk.f32.mxu1 %vm4102_vm1, %v4101_v24  ;;  %3733 = vmatprep.mubr.msk.f32.mxu0 %vm4102_vm1, %v4101_v24 }
 0x306   :  { %3736 = vmatprep.subr.mxu1 %v4101_v24  ;;  %3741 = vmatprep.subr.mxu0 %v4101_v24 }
 0x307   :  { %3729 = vmatmul.mubr.msk.f32.vlgmr.msra.gmra.mrb[6].mxu1 %vm190_vm2, %v171_v53  ;;  %3734 = vmatmul.mubr.msk.f32.vlgmr.msra.gmra.mrb[10].mxu0 %vm190_vm2, %v175_v56 }
 0x308   :  { %3738 = vmatprep.mubr.msk.f32.mxu1 %vm4102_vm1, %v4101_v24  ;;  %3743 = vmatprep.mubr.msk.f32.mxu0 %vm4102_vm1, %v4101_v24 }
 0x364   :  { %v261_v0 = vpop.f32.mrb[4].mxu0 }
 0x365   :  { %v3700_v1 = vpop.f32.mrb[5].mxu0  ;;  %v795_v2 = vsel %vm190_vm2, %v261_v0, -inf }
 0x366   :  { %796 = vmax.xlane.f32.xlu0 %v795_v2 }
 0x3ce   :  { %v4285_v5 = vpop.f32.mrb[0].mxu1 }
 0x3cf   :  { %v3705_v6 = vpop.f32.mrb[1].mxu1  ;;  %v798_v7 = vsel %vm190_vm2, %v4285_v5, -inf }
 0x3d0   :  { %799 = vmax.xlane.f32.xlu1 %v798_v7 }
 0x3d2   :  { %v413_v8 = vpop.f32.mrb[2].mxu1  ;;  %v489_v9 = vpop.f32.mrb[6].mxu0 }
 0x3d3   :  { %v3710_v10 = vpop.f32.mrb[3].mxu1  ;;  %v3715_v11 = vpop.f32.mrb[7].mxu0  ;;  %v804_v12 = vsel %vm190_vm2, %v489_v9, -inf  ;;  %v801_v18 = vsel %vm190_vm2, %v413_v8, -inf }
 0x3d4   :  { %805 = vmax.xlane.f32.xlu0 %v804_v12 }
 0x3d6   :  { %v563_v13 = vpop.f32.mrb[4].mxu1  ;;  %v4290_v14 = vpop.f32.mrb[8].mxu0 }
 0x3d7   :  { %v3720_v15 = vpop.f32.mrb[5].mxu1  ;;  %v3725_v16 = vpop.f32.mrb[9].mxu0  ;;  %v810_v17 = vsel %vm190_vm2, %v4290_v14, -inf  ;;  %v807_v25 = vsel %vm190_vm2, %v563_v13, -inf }
 0x3d8   :  { %811 = vmax.xlane.f32.xlu1 %v810_v17  ;;  %802 = vmax.xlane.f32.xlu0 %v801_v18 }
 0x3da   :  { %v715_v19 = vpop.f32.mrb[6].mxu1  ;;  %v4295_v20 = vpop.f32.mrb[10].mxu0 }
 0x3db   :  { %v3730_v21 = vpop.f32.mrb[7].mxu1  ;;  %v3735_v22 = vpop.f32.mrb[11].mxu0  ;;  %v816_v23 = vsel %vm190_vm2, %v4295_v20, -inf  ;;  %v813_v26 = vsel %vm190_vm2, %v715_v19, -inf }
 0x3dc   :  { %817 = vmax.xlane.f32.xlu1 %v816_v23  ;;  %808 = vmax.xlane.f32.xlu0 %v807_v25 }
 0x3e0   :  { %814 = vmax.xlane.f32.xlu0 %v813_v26 }
 0x3ed   :  { %186 = vrot.lane.b32.xlu1 %v4210_v47, %s4107_s25 }
 0x3f1   :  { %184 = vrot.lane.b32.xlu1 %v4220_v49, %s4108_s26 }
 0x3f3   :  { %v797_v27 = vpop.xlane.xlu0 %796 }
 0x3f4   :  { %v819_v28 = vsub.f32 %v261_v0, %v797_v27 }
 0x3f5   :  { %188 = vrot.lane.b32.xlu1 %v4220_v49, %s4107_s25 }
 0x3f6   :  { %182 = vrot.lane.b32.xlu0 %v4210_v47, %s4108_s26  ;;  %v827_v29 = vmul.f32 1.442695, %v819_v28 }
 0x3f8   :  { %3993 = vpow2.f32 %v827_v29 }
 0x3f9   :  { %959 = vrot.lane.b32.xlu1 %v4233_v55, %s4108_s26 }
 0x3fa   :  { %883 = vrot.lane.b32.xlu0 %v4206_v46, %s4108_s26 }
 0x3fe   :  { %1187 = vrot.lane.b32.xlu0 %v4214_v48, %s4108_s26 }
 0x402   :  { %v4315_v30 = vpop.eup %3993 }
 0x403   :  { %v843_v31 = vsel %vm190_vm2, %v4315_v30, 0.0 }
 0x41d   :  { %844 = vadd.xlane.f32.xlu0 %v843_v31 }
 0x45d   :  { %v800_v32 = vpop.xlane.xlu1 %799 }
 0x45e   :  { %v820_v62 = vsub.f32 %v4285_v5, %v800_v32 }
 0x460   :  { %v829_v63 = vmul.f32 1.442695, %v820_v62 }
 0x461   :  { %v806_v33 = vpop.xlane.xlu0 %805 }
 0x462   :  { %v822_v34 = vsub.f32 %v489_v9, %v806_v33 }
 0x464   :  { %v833_v35 = vmul.f32 1.442695, %v822_v34 }
 0x465   :  { %v812_v36 = vpop.xlane.xlu1 %811  ;;  %v803_v37 = vpop.xlane.xlu0 %802 }
 0x466   :  { %3995 = vpow2.f32 %v833_v35  ;;  %v821_v38 = vsub.f32 %v413_v8, %v803_v37  ;;  %v824_v0 = vsub.f32 %v4290_v14, %v812_v36 }
 0x468   :  { %v831_v39 = vmul.f32 1.442695, %v821_v38  ;;  %v837_v1 = vmul.f32 1.442695, %v824_v0 }
 0x469   :  { %v818_v40 = vpop.xlane.xlu1 %817  ;;  %v809_v41 = vpop.xlane.xlu0 %808 }
 0x46a   :  { %v823_v42 = vsub.f32 %v563_v13, %v809_v41  ;;  %3997 = vpow2.f32 %v831_v39  ;;  %v826_v2 = vsub.f32 %v4295_v20, %v818_v40 }
 0x46c   :  { %v835_v43 = vmul.f32 1.442695, %v823_v42  ;;  %v841_v6 = vmul.f32 1.442695, %v826_v2 }
 0x46d   :  { %v187_v44 = vpop.permute.xlu1 %186  ;;  %v815_v45 = vpop.xlane.xlu0 %814 }
 0x46e   :  { %v825_v46 = vsub.f32 %v715_v19, %v815_v45  ;;  %3999 = vpow2.f32 %v835_v43 }
 0x470   :  { %v4319_v47 = vpop.eup %3995  ;;  %v839_v48 = vmul.f32 1.442695, %v825_v46 }
 0x471   :  { %v185_v49 = vpop.permute.xlu1 %184  ;;  %v183_v50 = vpop.permute.xlu0 %182  ;;  %v852_v51 = vsel %vm190_vm2, %v4319_v47, 0.0 }
 0x472   :  { %4001 = vpow2.f32 %v839_v48  ;;  %853 = vadd.xlane.f32.xlu0 %v852_v51  ;;  %1035 = vrot.lane.b32.xlu1 %v183_v50, %s4108_s26 }
 0x473   :  { %4003 = vpow2.f32 %v829_v63 }
 0x474   :  { %v3998_v52 = vpop.eup %3997  ;;  %4005 = vpow2.f32 %v837_v1 }
 0x475   :  { %v189_v53 = vpop.permute.xlu1 %188  ;;  %v884_v54 = vpop.permute.xlu0 %883  ;;  %v849_v55 = vsel %vm190_vm2, %v3998_v52, 0.0  ;;  %4007 = vpow2.f32 %v841_v6 }
 0x476   :  { %1111 = vrot.lane.b32.xlu1 %v187_v44, %s4108_s26  ;;  %3737 = vmatpush3.msra.mxu1 %v884_v54 }
 0x477   :  { %850 = vadd.xlane.f32.xlu0 %v849_v55  ;;  %3746 = vmatprep.subr.mxu1 %v4101_v24 }
 0x478   :  { %v4000_v56 = vpop.eup %3999 }
 0x479   :  { %v960_v57 = vpop.permute.xlu1 %959  ;;  %v855_v58 = vsel %vm190_vm2, %v4000_v56, 0.0  ;;  %v1188_v11 = vpop.permute.xlu0 %1187 }
 0x47a   :  { %3742 = vmatpush3.msra.mxu0 %v960_v57  ;;  %1263 = vrot.lane.b32.xlu1 %v4250_v60, %s4108_s26  ;;  %v3527_v57 = vld [vmem:[%s4749_s5 + $0x4] ss:$0 sm:$0xff] }
 0x47b   :  { %856 = vadd.xlane.f32.xlu0 %v855_v58  ;;  %3751 = vmatprep.subr.mxu0 %v4101_v24 }
 0x47c   :  { %v4002_v59 = vpop.eup %4001 }
 0x47d   :  { %v861_v61 = vsel %vm190_vm2, %v4002_v59, 0.0  ;;  %v4004_v60 = vpop.eup %4003 }
 0x47e   :  { %v846_v7 = vsel %vm190_vm2, %v4004_v60, 0.0  ;;  %v4006_v8 = vpop.eup %4005 }
 0x47f   :  { %862 = vadd.xlane.f32.xlu0 %v861_v61  ;;  %v858_v9 = vsel %vm190_vm2, %v4006_v8, 0.0  ;;  %v4338_v5 = vpop.eup %4007 }
 0x480   :  { %v864_v10 = vsel %vm190_vm2, %v4338_v5, 0.0 }
 0x495   :  { %1339 = vrot.lane.b32.xlu0 %v185_v49, %s4108_s26 }
 0x49e   :  { %847 = vadd.xlane.f32.xlu1 %v846_v7 }
 0x4a2   :  { %859 = vadd.xlane.f32.xlu1 %v858_v9 }
 0x4a6   :  { %865 = vadd.xlane.f32.xlu1 %v864_v10 }
 0x4aa   :  { %v845_v12 = vpop.xlane.xlu0 %844 }
 0x4ab   :  { %4009 = vrcp.f32 %v845_v12 }
 0x4b5   :  { %v4010_v13 = vpop.eup %4009 }
 0x4b6   :  { %v875_v14 = vmul.f32 %v4010_v13, %v4315_v30 }
 0x4b7   :  { %1415 = vrot.lane.b32.xlu1 %v189_v53, %s4108_s26 }
 0x4b8   :  { %3739 = vmatmul.mubr.msk.f32.vlgmr.msra.gmra.mrb[8].mxu1 %vm190_vm2, %v875_v14 }
 0x4b9   :  { %3748 = vmatprep.mubr.msk.f32.mxu1 %vm4102_vm1, %v4101_v24 }
 0x4e4   :  { %v1036_v15 = vpop.permute.xlu1 %1035 }
 0x4e5   :  { %3747 = vmatpush3.msra.mxu1 %v1036_v15 }
 0x4e6   :  { %3756 = vmatprep.subr.mxu1 %v4101_v24 }
 0x4e8   :  { %v1112_v28 = vpop.permute.xlu1 %1111 }
 0x4ec   :  { %v1264_v29 = vpop.permute.xlu1 %1263 }
 0x4ff   :  { %v854_v16 = vpop.xlane.xlu0 %853 }
 0x504   :  { %v851_v17 = vpop.xlane.xlu0 %850 }
 0x505   :  { %4011 = vrcp.f32 %v851_v17  ;;  %v1546_v17 = vld [vmem:[%s4747_s3] sm:$0xff] }
 0x508   :  { %v857_v18 = vpop.xlane.xlu0 %856 }
 0x509   :  { %4013 = vrcp.f32 %v857_v18  ;;  %v1547_v18 = vld [vmem:[%s4747_s3 + $0x8] sm:$0xff] }
 0x50c   :  { %v863_v19 = vpop.xlane.xlu0 %862 }
 0x50d   :  { %4015 = vrcp.f32 %v863_v19  ;;  %v3924_v19 = vpack.c.bf16 %v1547_v18, %v1546_v17 }
 0x50f   :  { %v4012_v20 = vpop.eup %4011 }
 0x510   :  { %v877_v21 = vmul.f32 %v4012_v20, %v3998_v52  ;;  %v1340_v25 = vpop.permute.xlu0 %1339  ;;  %v1548_v20 = vld [vmem:[%s4747_s3 + $0x10] sm:$0xff] }
 0x512   :  { %3749 = vmatmul.mubr.msk.f32.vlgmr.msra.gmra.mrb[10].mxu1 %vm190_vm2, %v877_v21  ;;  %v1549_v21 = vld [vmem:[%s4747_s3 + $0x18] sm:$0xff] }
 0x513   :  { %v4014_v22 = vpop.eup %4013  ;;  %3757 = vmatpush3.msra.mxu1 %v1188_v11  ;;  %3758 = vmatprep.mubr.msk.f32.mxu1 %vm4102_vm1, %v4101_v24 }
 0x514   :  { %v879_v23 = vmul.f32 %v4014_v22, %v4000_v56  ;;  %3766 = vmatprep.subr.mxu1 %v4101_v24  ;;  %v3928_v22 = vpack.c.bf16 %v1549_v21, %v1548_v20 }
 0x516   :  { %3759 = vmatmul.mubr.msk.f32.vlgmr.msra.gmra.mrb[12].mxu1 %vm190_vm2, %v879_v23 }
 0x517   :  { %v4016_v26 = vpop.eup %4015  ;;  %3767 = vmatpush3.msra.mxu1 %v1340_v25  ;;  %3768 = vmatprep.mubr.msk.f32.mxu1 %vm4102_vm1, %v4101_v24 }
 0x518   :  { %v881_v27 = vmul.f32 %v4016_v26, %v4002_v59  ;;  %3925 = vmatprep.subr.bf16.mxu1 %v3924_v19 }
 0x51a   :  { %3769 = vmatmul.mubr.msk.f32.vlgmr.msra.gmra.mrb[14].mxu1 %vm190_vm2, %v881_v27 }
 0x51b   :  { %3927 = vmatpush3.bf16.msra.mxu1 %v3924_v19 }
 0x51c   :  { %3929 = vmatprep.subr.bf16.mxu1 %v3928_v22 }
 0x51f   :  { %3931 = vmatpush3.bf16.msra.mxu1 %v3928_v22 }
 0x52b   :  { %v848_v30 = vpop.xlane.xlu1 %847 }
 0x52c   :  { %4017 = vrcp.f32 %v848_v30 }
 0x52d   :  { %4019 = vrcp.f32 %v854_v16 }
 0x52f   :  { %v860_v31 = vpop.xlane.xlu1 %859 }
 0x530   :  { %4021 = vrcp.f32 %v860_v31  ;;  %v3528_v31 = vld [vmem:[%s4749_s5 + $0x2] ss:$0 sm:$0xff] }
 0x533   :  { %v866_v32 = vpop.xlane.xlu1 %865 }
 0x534   :  { %4023 = vrcp.f32 %v866_v32 }
 0x536   :  { %v4018_v33 = vpop.eup %4017 }
 0x537   :  { %v876_v34 = vmul.f32 %v4018_v33, %v4004_v60  ;;  %v4020_v35 = vpop.eup %4019  ;;  %v1416_v40 = vpop.permute.xlu1 %1415  ;;  %v3529_v33 = vld [vmem:[%s4749_s5 + $0x3] ss:$0 sm:$0xff] }
 0x538   :  { %v878_v36 = vmul.f32 %v4020_v35, %v4319_v47 }
 0x539   :  { %3744 = vmatmul.mubr.msk.f32.vlgmr.msra.gmra.mrb[12].mxu0 %vm190_vm2, %v876_v34 }
 0x53a   :  { %3752 = vmatpush3.msra.mxu0 %v1112_v28  ;;  %3753 = vmatprep.mubr.msk.f32.mxu0 %vm4102_vm1, %v4101_v24  ;;  %v4022_v37 = vpop.eup %4021 }
 0x53b   :  { %3761 = vmatprep.subr.mxu0 %v4101_v24  ;;  %v880_v38 = vmul.f32 %v4022_v37, %v4006_v8 }
 0x53d   :  { %3754 = vmatmul.mubr.msk.f32.vlgmr.msra.gmra.mrb[14].mxu0 %vm190_vm2, %v878_v36 }
 0x53e   :  { %3762 = vmatpush3.msra.mxu0 %v1264_v29  ;;  %3763 = vmatprep.mubr.msk.f32.mxu0 %vm4102_vm1, %v4101_v24  ;;  %v4024_v39 = vpop.eup %4023 }
 0x53f   :  { %3771 = vmatprep.subr.mxu0 %v4101_v24  ;;  %v882_v41 = vmul.f32 %v4024_v39, %v4338_v5 }
 0x541   :  { %3764 = vmatmul.mubr.msk.f32.vlgmr.msra.gmra.mrb[16].mxu0 %vm190_vm2, %v880_v38 }
 0x542   :  { %3772 = vmatpush3.msra.mxu0 %v1416_v40  ;;  %3773 = vmatprep.mubr.msk.f32.mxu0 %vm4102_vm1, %v4101_v24  ;;  %v1654_v40 = vld [vmem:[%s4748_s4] sm:$0xff] }
 0x545   :  { %3774 = vmatmul.mubr.msk.f32.vlgmr.msra.gmra.mrb[18].mxu0 %vm190_vm2, %v882_v41  ;;  %v1655_v41 = vld [vmem:[%s4748_s4 + $0x8] sm:$0xff] }
 0x58b   :  { %v955_v42 = vpop.f32.mrb[8].mxu1 }
 0x58c   :  { %v3740_v43 = vpop.f32.mrb[9].mxu1 }
 0x58d   :  { %v1656_v43 = vld [vmem:[%s4748_s4 + $0x10] sm:$0xff] }
 0x5e5   :  { %v1107_v44 = vpop.f32.mrb[10].mxu1 }
 0x5e6   :  { %v3750_v45 = vpop.f32.mrb[11].mxu1 }
 0x5e9   :  { %v1259_v46 = vpop.f32.mrb[12].mxu1 }
 0x5ea   :  { %v3760_v47 = vpop.f32.mrb[13].mxu1 }
 0x5eb   :  { %v1659_v47 = vld [vmem:[%s4748_s4 + $0x28] sm:$0xff] }
 0x5ed   :  { %v1411_v48 = vpop.f32.mrb[14].mxu1 }
 0x5ee   :  { %v3770_v49 = vpop.f32.mrb[15].mxu1 }
 0x5ef   :  { %v1660_v49 = vld [vmem:[%s4748_s4 + $0x30] sm:$0xff] }
 0x60c   :  { %v1031_v50 = vpop.f32.mrb[12].mxu0 }
 0x60d   :  { %v1491_v51 = vadd.f32 %v1031_v50, %v955_v42  ;;  %v3745_v52 = vpop.f32.mrb[13].mxu0  ;;  %v3932_v42 = vpack.c.bf16 %v1655_v41, %v1654_v40  ;;  %v1661_v50 = vld [vmem:[%s4748_s4 + $0x38] sm:$0xff]  ;;  %v3546_v41 = vld [vmem:[%s4746_s2 + $0x70] sm:$0xff] }
 0x60e   :  { %v3530_v52 = vld [vmem:[%s4747_s3 + $0x20] ss:$0 sm:$0xff] }
 0x60f   :  { %v1493_v53 = vadd.f32 %v1491_v51, %v1107_v44  ;;  %3933 = vmatprep.subr.bf16.mxu0 %v3932_v42  ;;  %v1657_v44 = vld [vmem:[%s4748_s4 + $0x18] sm:$0xff]  ;;  %v3944_v51 = vpack.c.bf16 %v1661_v50, %v1660_v49 }
 0x610   :  { %v1183_v54 = vpop.f32.mrb[14].mxu0  ;;  %3935 = vmatpush3.bf16.msra.mxu0 %v3932_v42  ;;  %v3936_v45 = vpack.c.bf16 %v1657_v44, %v1656_v43 }
 0x611   :  { %v1495_v55 = vadd.f32 %v1493_v53, %v1183_v54  ;;  %v3755_v56 = vpop.f32.mrb[15].mxu0 }
 0x612   :  { %3937 = vmatprep.subr.bf16.mxu0 %v3936_v45 }
 0x613   :  { %v1497_v58 = vadd.f32 %v1495_v55, %v4154_v3 }
 0x614   :  { %v1335_v59 = vpop.f32.mrb[16].mxu0  ;;  %3939 = vmatpush3.bf16.msra.mxu0 %v3936_v45 }
 0x615   :  { %v4374_v61 = vadd.f32 %v3527_v57, %v1497_v58  ;;  %v1492_v62 = vadd.f32 %v1335_v59, %v1259_v46  ;;  %v3765_v63 = vpop.f32.mrb[17].mxu0  ;;  %v1658_v46 = vld [vmem:[%s4748_s4 + $0x20] sm:$0xff] }
 0x617   :  { %v1494_v0 = vadd.f32 %v1492_v62, %v1411_v48  ;;  %v1508_v1 = vsel %vm31_vm0, %v4374_v61, 0.0  ;;  %v3940_v48 = vpack.c.bf16 %v1659_v47, %v1658_v46 }
 0x618   :  { %v1487_v2 = vpop.f32.mrb[18].mxu0  ;;  %1509 = vadd.xlane.f32.xlu0 %v1508_v1 }
 0x619   :  { %v1496_v6 = vadd.f32 %v1494_v0, %v1487_v2  ;;  %v3775_v60 = vpop.f32.mrb[19].mxu0  ;;  %3941 = vmatprep.subr.bf16.mxu0 %v3940_v48 }
 0x61a   :  { %3943 = vmatpush3.bf16.msra.mxu0 %v3940_v48 }
 0x61b   :  { %v1498_v7 = vadd.f32 %v1496_v6, %v4156_v4  ;;  %3945 = vmatprep.subr.bf16.mxu0 %v3944_v51 }
 0x61d   :  { %v4379_v8 = vadd.f32 %v3527_v57, %v1498_v7 }
 0x61e   :  { %3947 = vmatpush3.bf16.msra.mxu0 %v3944_v51  ;;  %v3538_v51 = vld [vmem:[%s4749_s5 + $0x8] ss:$0 sm:$0xff] }
 0x61f   :  { %v1511_v3 = vsel %vm31_vm0, %v4379_v8, 0.0  ;;  %3806 = vmatprep.subr.mxu0 %v4101_v24 }
 0x620   :  { %1512 = vadd.xlane.f32.xlu1 %v1511_v3 }
 0x6a5   :  { %v1510_v9 = vpop.xlane.xlu0 %1509 }
 0x6a6   :  { %v1514_v5 = vmul.f32 0.03125, %v1510_v9 }
 0x6a8   :  { %v1516_v10 = vsub.f32 %v4374_v61, %v1514_v5 }
 0x6aa   :  { %v1518_v11 = vmul.f32 %v1516_v10, %v1516_v10 }
 0x6ac   :  { %v1520_v12 = vsel %vm31_vm0, %v1518_v11, 0.0 }
 0x6ad   :  { %v1513_v13 = vpop.xlane.xlu1 %1512  ;;  %1521 = vadd.xlane.f32.xlu0 %v1520_v12 }
 0x6ae   :  { %v1515_v14 = vmul.f32 0.03125, %v1513_v13 }
 0x6b0   :  { %v1517_v15 = vsub.f32 %v4379_v8, %v1515_v14 }
 0x6b2   :  { %v1519_v16 = vmul.f32 %v1517_v15, %v1517_v15 }
 0x6b4   :  { %v1523_v4 = vsel %vm31_vm0, %v1519_v16, 0.0 }
 0x6b5   :  { %1524 = vadd.xlane.f32.xlu0 %v1523_v4 }
 0x73a   :  { %v1522_v23 = vpop.xlane.xlu0 %1521 }
 0x73b   :  { %v1526_v25 = vmul.f32 0.03125, %v1522_v23 }
 0x73d   :  { %v1528_v26 = vadd.f32 1e-05, %v1526_v25 }
 0x73f   :  { %4025 = vrsqrt.f32 %v1528_v26 }
 0x742   :  { %v1525_v27 = vpop.xlane.xlu0 %1524 }
 0x743   :  { %v1527_v28 = vmul.f32 0.03125, %v1525_v27 }
 0x745   :  { %v1529_v29 = vadd.f32 1e-05, %v1527_v28 }
 0x747   :  { %4027 = vrsqrt.f32 %v1529_v29 }
 0x749   :  { %v4026_v30 = vpop.eup %4025 }
 0x74a   :  { %v1532_v32 = vmul.f32 %v4026_v30, %v1516_v10 }
 0x74c   :  { %v1538_v34 = vmul.f32 %v3528_v31, %v1532_v32  ;;  %v3543_v32 = vld [vmem:[%s4746_s2 + $0x58] sm:$0xff] }
 0x74e   :  { %v1544_v35 = vadd.f32 %v3529_v33, %v1538_v34  ;;  %v3540_v34 = vld [vmem:[%s4746_s2 + $0x40] sm:$0xff] }
 0x750   :  { %3784 = vmatprep.mubr.msk.f32.mxu1 %vm31_vm0, %v1544_v35  ;;  %v3542_v35 = vld [vmem:[%s4746_s2 + $0x50] sm:$0xff] }
 0x751   :  { %v4028_v36 = vpop.eup %4027 }
 0x752   :  { %v1533_v37 = vmul.f32 %v4028_v36, %v1517_v15  ;;  %v3535_v15 = vld [vmem:[%s4749_s5 + $0x5] ss:$0 sm:$0xff]  ;;  %v3950_v36 = vpack.c.bf16 %v3542_v35, %v3540_v34 }
 0x754   :  { %v1539_v38 = vmul.f32 %v3528_v31, %v1533_v37  ;;  %v3541_v31 = vld [vmem:[%s4746_s2 + $0x48] sm:$0xff] }
 0x755   :  { %v3545_v37 = vld [vmem:[%s4746_s2 + $0x68] sm:$0xff] }
 0x756   :  { %v1545_v39 = vadd.f32 %v3529_v33, %v1539_v38  ;;  %v3948_v33 = vpack.c.bf16 %v3543_v32, %v3541_v31  ;;  %v3547_v38 = vld [vmem:[%s4746_s2 + $0x78] sm:$0xff] }
 0x757   :  { %v3952_v40 = vpack.c.bf16 %v3547_v38, %v3545_v37 }
 0x758   :  { %3785 = vmatmul.mubr.msk.f32.vlgmr.msra.gmra.mrb[16].mxu1 %vm31_vm0, %v1545_v39  ;;  %3949 = vmatprep.subr.bf16.mxu1 %v3948_v33  ;;  %v3544_v39 = vld [vmem:[%s4746_s2 + $0x60] sm:$0xff] }
 0x759   :  { %1873 = vmatprep.mubr.f32.mxu1 %v4101_v24  ;;  %3951 = vmatpush1.bf16.msra.mxu1 %v3950_v36  ;;  %v3954_v42 = vpack.c.bf16 %v3546_v41, %v3544_v39 }
 0x75a   :  { %3953 = vmatprep.subr.bf16.mxu1 %v3952_v40 }
 0x75d   :  { %3955 = vmatpush1.bf16.msra.mxu1 %v3954_v42 }
 0x75e   :  { %3811 = vmatprep.subr.mxu1 %v4101_v24 }
 0x82b   :  { %v3786_v53 = vpop.f32.mrb[16].mxu1 }
 0x82c   :  { %v1633_v54 = vadd.f32 %v3786_v53, %v3530_v52  ;;  %v1627_v55 = vpop.f32.mrb[17].mxu1 }
 0x82d   :  { %v1628_v56 = vadd.f32 %v3530_v52, %v1627_v55 }
 0x82e   :  { %v1639_v57 = vmul.f32 %v1633_v54, %v1633_v54  ;;  %v1637_v11 = vmul.f32 0.5, %v1633_v54 }
 0x82f   :  { %v1638_v58 = vmul.f32 %v1628_v56, %v1628_v56  ;;  %v1636_v5 = vmul.f32 0.5, %v1628_v56 }
 0x830   :  { %v1641_v59 = vmul.f32 %v1639_v57, %v1633_v54 }
 0x831   :  { %v1640_v62 = vmul.f32 %v1638_v58, %v1628_v56 }
 0x832   :  { %v1643_v63 = vmul.f32 0.044715, %v1641_v59 }
 0x833   :  { %v1642_v0 = vmul.f32 0.044715, %v1640_v62 }
 0x834   :  { %v1645_v1 = vadd.f32 %v1643_v63, %v1633_v54  ;;  %v3539_v54 = vld [vmem:[%s4749_s5 + $0x9] ss:$0 sm:$0xff] }
 0x835   :  { %v1644_v2 = vadd.f32 %v1642_v0, %v1628_v56 }
 0x836   :  { %v1647_v6 = vmul.f32 0.7978846, %v1645_v1 }
 0x837   :  { %v1646_v60 = vmul.f32 0.7978846, %v1644_v2 }
 0x838   :  { %4029 = vtanh.f32 %v1647_v6 }
 0x839   :  { %4031 = vtanh.f32 %v1646_v60 }
 0x842   :  { %v4030_v7 = vpop.eup %4029 }
 0x843   :  { %v4032_v3 = vpop.eup %4031  ;;  %v1651_v9 = vadd.f32 1.0, %v4030_v7 }
 0x844   :  { %v1650_v10 = vadd.f32 1.0, %v4032_v3 }
 0x845   :  { %v1653_v13 = vmul.f32 %v1651_v9, %v1637_v11 }
 0x846   :  { %v1652_v12 = vmul.f32 %v1650_v10, %v1636_v5 }
 0x848   :  { %3803 = vmatprep.mubr.msk.f32.mxu0 %vm1662_vm3, %v1652_v12 }
 0x849   :  { %3804 = vmatmul.mubr.msk.f32.vlgmr.msra.gmra.mrb[20].mxu0 %vm1662_vm3, %v1653_v13 }
 0x84a   :  { %3808 = vmatprep.mubr.msk.f32.mxu0 %vm4102_vm1, %v4101_v24 }
 0x91c   :  { %v3805_v14 = vpop.f32.mrb[20].mxu0 }
 0x91d   :  { %v1745_v16 = vadd.f32 %v3805_v14, %v4379_v8  ;;  %v1735_v4 = vpop.f32.mrb[21].mxu0 }
 0x91e   :  { %v1744_v17 = vadd.f32 %v1735_v4, %v4374_v61 }
 0x91f   :  { %v4445_v18 = vadd.f32 %v3535_v15, %v1745_v16 }
 0x920   :  { %v4447_v19 = vadd.f32 %v3535_v15, %v1744_v17 }
 0x921   :  { %v1759_v20 = vsel %vm31_vm0, %v4445_v18, 0.0 }
 0x922   :  { %1760 = vadd.xlane.f32.xlu1 %v1759_v20  ;;  %v1756_v21 = vsel %vm31_vm0, %v4447_v19, 0.0 }
 0x923   :  { %1757 = vadd.xlane.f32.xlu0 %v1756_v21 }
 0x9af   :  { %v1761_v22 = vpop.xlane.xlu1 %1760 }
 0x9b0   :  { %v1763_v23 = vmul.f32 0.03125, %v1761_v22  ;;  %v1758_v25 = vpop.xlane.xlu0 %1757 }
 0x9b1   :  { %v1762_v26 = vmul.f32 0.03125, %v1758_v25 }
 0x9b2   :  { %v1765_v8 = vsub.f32 %v4445_v18, %v1763_v23 }
 0x9b3   :  { %v1764_v61 = vsub.f32 %v4447_v19, %v1762_v26 }
 0x9b4   :  { %v1767_v27 = vmul.f32 %v1765_v8, %v1765_v8 }
 0x9b5   :  { %v1766_v28 = vmul.f32 %v1764_v61, %v1764_v61 }
 0x9b6   :  { %v1771_v29 = vsel %vm31_vm0, %v1767_v27, 0.0 }
 0x9b7   :  { %1772 = vadd.xlane.f32.xlu1 %v1771_v29  ;;  %v1768_v30 = vsel %vm31_vm0, %v1766_v28, 0.0 }
 0x9b8   :  { %1769 = vadd.xlane.f32.xlu0 %v1768_v30 }
 0xa44   :  { %v1773_v43 = vpop.xlane.xlu1 %1772 }
 0xa45   :  { %v1775_v44 = vmul.f32 0.03125, %v1773_v43  ;;  %v1770_v45 = vpop.xlane.xlu0 %1769 }
 0xa46   :  { %v1774_v46 = vmul.f32 0.03125, %v1770_v45 }
 0xa47   :  { %v1777_v47 = vadd.f32 1e-05, %v1775_v44 }
 0xa48   :  { %v1776_v48 = vadd.f32 1e-05, %v1774_v46 }
 0xa49   :  { %4033 = vrsqrt.f32 %v1777_v47 }
 0xa4a   :  { %4035 = vrsqrt.f32 %v1776_v48 }
 0xa53   :  { %v4034_v49 = vpop.eup %4033 }
 0xa54   :  { %v4036_v50 = vpop.eup %4035  ;;  %v1781_v53 = vmul.f32 %v4034_v49, %v1765_v8 }
 0xa55   :  { %v1780_v52 = vmul.f32 %v4036_v50, %v1764_v61 }
 0xa56   :  { %v1787_v57 = vmul.f32 %v3538_v51, %v1781_v53 }
 0xa57   :  { %v1786_v55 = vmul.f32 %v3538_v51, %v1780_v52 }
 0xa58   :  { %v1793_v58 = vadd.f32 %v3539_v54, %v1787_v57 }
 0xa59   :  { %v1792_v56 = vadd.f32 %v3539_v54, %v1786_v55 }
 0xa5b   :  { %3548 = vmatmul.mubr.msk.f32.vlgmr.msra.gmra.mrb[18].mxu1 %vm31_vm0, %v1792_v56 }
 0xa5c   :  { %1879 = vmatprep.mubr.f32.mxu1 %v4101_v24 }
 0xa5f   :  { %3549 = vmatmul.mubr.msk.f32.gmra.mrb[20].mxu1 %vm31_vm0, %v1793_v58 }
 0xa60   :  { %3813 = vmatprep.mubr.msk.f32.mxu1 %vm4102_vm1, %v4101_v24 }
 0xb2e   :  { %v4493_v59 = vpop.f32.mrb[18].mxu1 }
 0xb2f   :  { %1892 = vrot.lane.b32.xlu1 %v4493_v59, %s4104_s22  ;;  %1888 = vrot.lane.b32.xlu0 %v4493_v59, %s4103_s21  ;;  %v4499_v62 = vpop.f32.mrb[19].mxu1 }
 0xb32   :  { %v4501_v63 = vpop.f32.mrb[20].mxu1 }
 0xb33   :  { %1896 = vrot.lane.b32.xlu1 %v4493_v59, %s4105_s23  ;;  %1894 = vrot.lane.b32.xlu0 %v4501_v63, %s4104_s22  ;;  %v4507_v0 = vpop.f32.mrb[21].mxu1 }
 0xb37   :  { %1900 = vrot.lane.b32.xlu0 %v4493_v59, %s4106_s24  ;;  %1890 = vrot.lane.b32.xlu1 %v4501_v63, %s4103_s21 }
 0xb3b   :  { %1898 = vrot.lane.b32.xlu1 %v4501_v63, %s4105_s23 }
 0xba1   :  { %v1893_v1 = vpop.permute.xlu1 %1892  ;;  %v1889_v2 = vpop.permute.xlu0 %1888 }
 0xba2   :  { %2064 = vrot.lane.b32.xlu0 %v1893_v1, %s4106_s24  ;;  %1988 = vrot.lane.b32.xlu1 %v1889_v2, %s4106_s24 }
 0xba5   :  { %v1897_v6 = vpop.permute.xlu1 %1896  ;;  %v1895_v60 = vpop.permute.xlu0 %1894 }
 0xba6   :  { %1902 = vrot.lane.b32.xlu0 %v4501_v63, %s4106_s24  ;;  %2140 = vrot.lane.b32.xlu1 %v1897_v6, %s4106_s24 }
 0xba9   :  { %v4520_v7 = vpop.permute.xlu0 %1900  ;;  %v1891_v3 = vpop.permute.xlu1 %1890 }
 0xbaa   :  { %2366 = vrot.lane.b32.xlu0 %v1895_v60, %s4106_s24  ;;  %3807 = vmatpush3.xpose.msk.msra.mxu0 %vm190_vm2, %v4520_v7 }
 0xbab   :  { %2290 = vrot.lane.b32.xlu1 %v1891_v3, %s4106_s24  ;;  %3816 = vmatprep.subr.mxu0 %v4101_v24 }
 0xbad   :  { %3809 = vmatmul.mubr.msk.f32.vlgmr.msra.gmra.mrb[22].mxu0 %vm190_vm2, %v4493_v59  ;;  %v1899_v9 = vpop.permute.xlu1 %1898 }
 0xbae   :  { %3818 = vmatprep.mubr.msk.f32.mxu0 %vm4102_vm1, %v4101_v24 }
 0xbaf   :  { %2442 = vrot.lane.b32.xlu1 %v1899_v9, %s4106_s24 }
 0xc14   :  { %v2065_v5 = vpop.permute.xlu0 %2064  ;;  %v1989_v10 = vpop.permute.xlu1 %1988 }
 0xc15   :  { %3812 = vmatpush3.xpose.msk.msra.mxu1 %vm190_vm2, %v1989_v10  ;;  %3817 = vmatpush3.xpose.msk.msra.mxu0 %vm190_vm2, %v2065_v5 }
 0xc16   :  { %3826 = vmatprep.subr.mxu0 %v4101_v24  ;;  %3821 = vmatprep.subr.mxu1 %v4101_v24 }
 0xc18   :  { %3819 = vmatmul.mubr.msk.f32.vlgmr.msra.gmra.mrb[24].mxu0 %vm190_vm2, %v1893_v1  ;;  %v4537_v11 = vpop.permute.xlu0 %1902  ;;  %3814 = vmatmul.mubr.msk.f32.vlgmr.msra.gmra.mrb[22].mxu1 %vm190_vm2, %v1889_v2  ;;  %v2141_v12 = vpop.permute.xlu1 %2140 }
 0xc19   :  { %3822 = vmatpush3.xpose.msk.msra.mxu1 %vm190_vm2, %v2141_v12  ;;  %3827 = vmatpush3.xpose.msk.msra.mxu0 %vm190_vm2, %v4537_v11 }
 0xc1a   :  { %3823 = vmatprep.mubr.msk.f32.mxu1 %vm4102_vm1, %v4101_v24  ;;  %3828 = vmatprep.mubr.msk.f32.mxu0 %vm4102_vm1, %v4101_v24 }
 0xc1b   :  { %3836 = vmatprep.subr.mxu0 %v4101_v24  ;;  %3831 = vmatprep.subr.mxu1 %v4101_v24 }
 0xc1c   :  { %3829 = vmatmul.mubr.msk.f32.vlgmr.msra.gmra.mrb[26].mxu0 %vm190_vm2, %v4501_v63  ;;  %v2367_v13 = vpop.permute.xlu0 %2366  ;;  %3824 = vmatmul.mubr.msk.f32.vlgmr.msra.gmra.mrb[24].mxu1 %vm190_vm2, %v1897_v6 }
 0xc1d   :  { %v2291_v14 = vpop.permute.xlu1 %2290  ;;  %3837 = vmatpush3.xpose.msk.msra.mxu0 %vm190_vm2, %v2367_v13  ;;  %3833 = vmatprep.mubr.msk.f32.mxu1 %vm4102_vm1, %v4101_v24 }
 0xc1e   :  { %3832 = vmatpush3.xpose.msk.msra.mxu1 %vm190_vm2, %v2291_v14  ;;  %3838 = vmatprep.mubr.msk.f32.mxu0 %vm4102_vm1, %v4101_v24 }
 0xc1f   :  { %3841 = vmatprep.subr.mxu1 %v4101_v24  ;;  %3846 = vmatprep.subr.mxu0 %v4101_v24 }
 0xc20   :  { %3839 = vmatmul.mubr.msk.f32.vlgmr.msra.gmra.mrb[28].mxu0 %vm190_vm2, %v1895_v60 }
 0xc21   :  { %3834 = vmatmul.mubr.msk.f32.vlgmr.msra.gmra.mrb[26].mxu1 %vm190_vm2, %v1891_v3  ;;  %v2443_v15 = vpop.permute.xlu1 %2442  ;;  %3848 = vmatprep.mubr.msk.f32.mxu0 %vm4102_vm1, %v4101_v24 }
 0xc22   :  { %3842 = vmatpush3.xpose.msk.msra.mxu1 %vm190_vm2, %v2443_v15  ;;  %3843 = vmatprep.mubr.msk.f32.mxu1 %vm4102_vm1, %v4101_v24 }
 0xc23   :  { %3851 = vmatprep.subr.mxu1 %v4101_v24 }
 0xc25   :  { %3844 = vmatmul.mubr.msk.f32.vlgmr.msra.gmra.mrb[28].mxu1 %vm190_vm2, %v1899_v9 }
 0xc26   :  { %3853 = vmatprep.mubr.msk.f32.mxu1 %vm4102_vm1, %v4101_v24 }
 0xc80   :  { %v1984_v16 = vpop.f32.mrb[22].mxu0 }
 0xc81   :  { %v3810_v4 = vpop.f32.mrb[23].mxu0  ;;  %v2518_v17 = vsel %vm190_vm2, %v1984_v16, -inf }
 0xc82   :  { %2519 = vmax.xlane.f32.xlu0 %v2518_v17 }
 0xceb   :  { %v4572_v20 = vpop.f32.mrb[22].mxu1  ;;  %v2136_v21 = vpop.f32.mrb[24].mxu0 }
 0xcec   :  { %v3815_v22 = vpop.f32.mrb[23].mxu1  ;;  %v3820_v23 = vpop.f32.mrb[25].mxu0  ;;  %v2524_v25 = vsel %vm190_vm2, %v2136_v21, -inf  ;;  %v2521_v26 = vsel %vm190_vm2, %v4572_v20, -inf }
 0xced   :  { %2525 = vmax.xlane.f32.xlu0 %v2524_v25  ;;  %2522 = vmax.xlane.f32.xlu1 %v2521_v26 }
 0xcef   :  { %v2212_v8 = vpop.f32.mrb[24].mxu1  ;;  %v2286_v61 = vpop.f32.mrb[26].mxu0 }
 0xcf0   :  { %v3825_v27 = vpop.f32.mrb[25].mxu1  ;;  %v3830_v28 = vpop.f32.mrb[27].mxu0  ;;  %v2527_v29 = vsel %vm190_vm2, %v2212_v8, -inf  ;;  %v2530_v33 = vsel %vm190_vm2, %v2286_v61, -inf }
 0xcf1   :  { %2528 = vmax.xlane.f32.xlu0 %v2527_v29 }
 0xcf3   :  { %v2438_v30 = vpop.f32.mrb[28].mxu0 }
 0xcf4   :  { %v4578_v31 = vpop.f32.mrb[26].mxu1  ;;  %v3840_v32 = vpop.f32.mrb[29].mxu0  ;;  %v2536_v37 = vsel %vm190_vm2, %v2438_v30, -inf }
 0xcf5   :  { %v3835_v34 = vpop.f32.mrb[27].mxu1  ;;  %2531 = vmax.xlane.f32.xlu0 %v2530_v33  ;;  %v2533_v35 = vsel %vm190_vm2, %v4578_v31, -inf }
 0xcf6   :  { %2534 = vmax.xlane.f32.xlu1 %v2533_v35 }
 0xcf8   :  { %v4583_v36 = vpop.f32.mrb[28].mxu1 }
 0xcf9   :  { %v3845_v38 = vpop.f32.mrb[29].mxu1  ;;  %2537 = vmax.xlane.f32.xlu0 %v2536_v37  ;;  %v2539_v42 = vsel %vm190_vm2, %v4583_v36, -inf }
 0xd07   :  { %1910 = vrot.lane.b32.xlu1 %v4499_v62, %s4107_s25 }
 0xd0f   :  { %1906 = vrot.lane.b32.xlu0 %v4499_v62, %s4108_s26  ;;  %v2520_v39 = vpop.xlane.xlu0 %2519 }
 0xd10   :  { %v2542_v40 = vsub.f32 %v1984_v16, %v2520_v39 }
 0xd12   :  { %v2550_v41 = vmul.f32 1.442695, %v2542_v40 }
 0xd13   :  { %2606 = vrot.lane.b32.xlu0 %v4493_v59, %s4108_s26 }
 0xd14   :  { %4037 = vpow2.f32 %v2550_v41 }
 0xd17   :  { %2910 = vrot.lane.b32.xlu0 %v4501_v63, %s4108_s26 }
 0xd1e   :  { %v4596_v43 = vpop.eup %4037 }
 0xd1f   :  { %v2566_v44 = vsel %vm190_vm2, %v4596_v43, 0.0 }
 0xd2b   :  { %2540 = vmax.xlane.f32.xlu1 %v2539_v42 }
 0xd36   :  { %2567 = vadd.xlane.f32.xlu0 %v2566_v44 }
 0xd3c   :  { %1908 = vrot.lane.b32.xlu1 %v4507_v0, %s4108_s26 }
 0xd40   :  { %1912 = vrot.lane.b32.xlu1 %v4507_v0, %s4107_s25 }
 0xd44   :  { %2682 = vrot.lane.b32.xlu1 %v4520_v7, %s4108_s26 }
 0xd7a   :  { %v2526_v45 = vpop.xlane.xlu0 %2525  ;;  %v2523_v53 = vpop.xlane.xlu1 %2522 }
 0xd7b   :  { %v2544_v46 = vsub.f32 %v2136_v21, %v2526_v45  ;;  %v2543_v5 = vsub.f32 %v4572_v20, %v2523_v53 }
 0xd7d   :  { %v2554_v47 = vmul.f32 1.442695, %v2544_v46  ;;  %v2552_v10 = vmul.f32 1.442695, %v2543_v5 }
 0xd7e   :  { %v2529_v48 = vpop.xlane.xlu0 %2528 }
 0xd7f   :  { %4039 = vpow2.f32 %v2554_v47  ;;  %v2545_v49 = vsub.f32 %v2212_v8, %v2529_v48 }
 0xd81   :  { %v2556_v50 = vmul.f32 1.442695, %v2545_v49 }
 0xd82   :  { %v2532_v51 = vpop.xlane.xlu0 %2531 }
 0xd83   :  { %4041 = vpow2.f32 %v2556_v50  ;;  %v2546_v52 = vsub.f32 %v2286_v61, %v2532_v51  ;;  %v2535_v58 = vpop.xlane.xlu1 %2534 }
 0xd84   :  { %v2547_v12 = vsub.f32 %v4578_v31, %v2535_v58 }
 0xd85   :  { %v2558_v54 = vmul.f32 1.442695, %v2546_v52 }
 0xd86   :  { %v2538_v55 = vpop.xlane.xlu0 %2537  ;;  %v2560_v13 = vmul.f32 1.442695, %v2547_v12 }
 0xd87   :  { %4043 = vpow2.f32 %v2558_v54  ;;  %v2548_v56 = vsub.f32 %v2438_v30, %v2538_v55  ;;  %v1911_v6 = vpop.permute.xlu1 %1910 }
 0xd89   :  { %v4606_v57 = vpop.eup %4039  ;;  %v2562_v59 = vmul.f32 1.442695, %v2548_v56 }
 0xd8a   :  { %v1907_v62 = vpop.permute.xlu0 %1906  ;;  %v2572_v63 = vsel %vm190_vm2, %v4606_v57, 0.0 }
 0xd8b   :  { %4045 = vpow2.f32 %v2562_v59  ;;  %2573 = vadd.xlane.f32.xlu0 %v2572_v63  ;;  %2758 = vrot.lane.b32.xlu1 %v1907_v62, %s4108_s26 }
 0xd8c   :  { %4047 = vpow2.f32 %v2552_v10 }
 0xd8d   :  { %v4611_v0 = vpop.eup %4041  ;;  %4049 = vpow2.f32 %v2560_v13 }
 0xd8e   :  { %v2607_v1 = vpop.permute.xlu0 %2606  ;;  %v2575_v2 = vsel %vm190_vm2, %v4611_v0, 0.0 }
 0xd8f   :  { %2576 = vadd.xlane.f32.xlu0 %v2575_v2  ;;  %3847 = vmatpush3.msra.mxu0 %v2607_v1 }
 0xd90   :  { %2834 = vrot.lane.b32.xlu1 %v1911_v6, %s4108_s26  ;;  %3856 = vmatprep.subr.mxu0 %v4101_v24 }
 0xd91   :  { %v4044_v60 = vpop.eup %4043 }
 0xd92   :  { %v2578_v7 = vsel %vm190_vm2, %v4044_v60, 0.0  ;;  %v2911_v22 = vpop.permute.xlu0 %2910 }
 0xd93   :  { %2579 = vadd.xlane.f32.xlu0 %v2578_v7 }
 0xd94   :  { %2986 = vrot.lane.b32.xlu1 %v4537_v11, %s4108_s26 }
 0xd95   :  { %v4046_v3 = vpop.eup %4045 }
 0xd96   :  { %v2584_v9 = vsel %vm190_vm2, %v4046_v3, 0.0  ;;  %v4048_v14 = vpop.eup %4047 }
 0xd97   :  { %2585 = vadd.xlane.f32.xlu0 %v2584_v9  ;;  %v2569_v15 = vsel %vm190_vm2, %v4048_v14, 0.0  ;;  %v4624_v16 = vpop.eup %4049 }
 0xd98   :  { %v2581_v21 = vsel %vm190_vm2, %v4624_v16, 0.0 }
 0xdb8   :  { %2570 = vadd.xlane.f32.xlu1 %v2569_v15  ;;  %v2541_v4 = vpop.xlane.xlu1 %2540 }
 0xdb9   :  { %v2549_v11 = vsub.f32 %v4583_v36, %v2541_v4 }
 0xdbb   :  { %v2564_v17 = vmul.f32 1.442695, %v2549_v11 }
 0xdbc   :  { %2582 = vadd.xlane.f32.xlu1 %v2581_v21  ;;  %v1909_v20 = vpop.permute.xlu1 %1908 }
 0xdbd   :  { %4051 = vpow2.f32 %v2564_v17  ;;  %3062 = vrot.lane.b32.xlu0 %v1909_v20, %s4108_s26 }
 0xdc0   :  { %v1913_v23 = vpop.permute.xlu1 %1912 }
 0xdc3   :  { %v2568_v25 = vpop.xlane.xlu0 %2567 }
 0xdc4   :  { %4053 = vrcp.f32 %v2568_v25  ;;  %v2683_v26 = vpop.permute.xlu1 %2682 }
 0xdc5   :  { %3852 = vmatpush3.msra.mxu1 %v2683_v26 }
 0xdc6   :  { %3861 = vmatprep.subr.mxu1 %v4101_v24 }
 0xdc7   :  { %v4052_v8 = vpop.eup %4051 }
 0xdc8   :  { %v2587_v61 = vsel %vm190_vm2, %v4052_v8, 0.0 }
 0xdc9   :  { %2588 = vadd.xlane.f32.xlu1 %v2587_v61 }
 0xdce   :  { %v4054_v27 = vpop.eup %4053 }
 0xdcf   :  { %v2598_v28 = vmul.f32 %v4054_v27, %v4596_v43 }
 0xdd1   :  { %3849 = vmatmul.mubr.msk.f32.vlgmr.msra.gmra.mrb[30].mxu0 %vm190_vm2, %v2598_v28 }
 0xdd2   :  { %3858 = vmatprep.mubr.msk.f32.mxu0 %vm4102_vm1, %v4101_v24 }
 0xdda   :  { %3138 = vrot.lane.b32.xlu1 %v1913_v23, %s4108_s26  ;;  %s4109_s26 = smov [#allocation2]  }
 0xddb   :  { %s3491_s14 = sshll.u32 %s4109_s26, 4  ;;  %s3492_s14 = int_to_ptr.vmem [resolvable:$true] %s3491_s14 }
 0xddc   :  { %s4077_s15 = scalar_lea.vmem %s3492_s14, 32  ;;  %p4082_p1 = scmp.lt.s32.totalorder %s3492_s14, %s3492_s14 }
 0xddd   :  { %p4078_p0 = scmp.ne.s32.totalorder %s3492_s14, %s4077_s15  ;;  %p4083_p2 = scmp.lt.s32.totalorder %s4077_s15, %s4077_s15 }
 0xddf   :  { %p4084_p3 = por %p4083_p2, %p4082_p1 }
 0xde1   :  { %p4085_p4 = pnand %p4084_p3, %p4078_p0 }
 0xdfd   :  { %v2759_v29 = vpop.permute.xlu1 %2758 }
 0xdfe   :  { %3857 = vmatpush3.msra.mxu0 %v2759_v29 }
 0xdff   :  { %3866 = vmatprep.subr.mxu0 %v4101_v24 }
 0xe02   :  { %v2835_v41 = vpop.permute.xlu1 %2834 }
 0xe06   :  { %v2987_v42 = vpop.permute.xlu1 %2986 }
 0xe18   :  { %v2574_v30 = vpop.xlane.xlu0 %2573 }
 0xe19   :  { %4055 = vrcp.f32 %v2574_v30  ;;  %v3580_v30 = vld [vmem:[%s4747_s3 + $0x28] sm:$0xff] }
 0xe1c   :  { %v2577_v31 = vpop.xlane.xlu0 %2576 }
 0xe20   :  { %v2580_v32 = vpop.xlane.xlu0 %2579 }
 0xe21   :  { %4057 = vrcp.f32 %v2580_v32 }
 0xe23   :  { %v4056_v33 = vpop.eup %4055 }
 0xe24   :  { %v2600_v34 = vmul.f32 %v4056_v33, %v4606_v57  ;;  %v2586_v35 = vpop.xlane.xlu0 %2585  ;;  %v3582_v33 = vld [vmem:[%s4747_s3 + $0x38] sm:$0xff] }
 0xe25   :  { %4059 = vrcp.f32 %v2586_v35 }
 0xe26   :  { %3859 = vmatmul.mubr.msk.f32.vlgmr.msra.gmra.mrb[32].mxu0 %vm190_vm2, %v2600_v34  ;;  %v3583_v34 = vld [vmem:[%s4747_s3 + $0x40] sm:$0xff] }
 0xe27   :  { %3867 = vmatpush3.msra.mxu0 %v2911_v22  ;;  %3868 = vmatprep.mubr.msk.f32.mxu0 %vm4102_vm1, %v4101_v24  ;;  %v3960_v35 = vpack.c.bf16 %v3583_v34, %v3582_v33 }
 0xe28   :  { %3876 = vmatprep.subr.mxu0 %v4101_v24 }
 0xe2b   :  { %v4058_v36 = vpop.eup %4057 }
 0xe2c   :  { %v2602_v37 = vmul.f32 %v4058_v36, %v4044_v60 }
 0xe2e   :  { %3869 = vmatmul.mubr.msk.f32.vlgmr.msra.gmra.mrb[34].mxu0 %vm190_vm2, %v2602_v37 }
 0xe2f   :  { %v4060_v38 = vpop.eup %4059  ;;  %v3063_v39 = vpop.permute.xlu0 %3062  ;;  %3878 = vmatprep.mubr.msk.f32.mxu0 %vm4102_vm1, %v4101_v24 }
 0xe30   :  { %v2604_v40 = vmul.f32 %v4060_v38, %v4046_v3  ;;  %3877 = vmatpush3.msra.mxu0 %v3063_v39 }
 0xe32   :  { %3879 = vmatmul.mubr.msk.f32.vlgmr.msra.gmra.mrb[36].mxu0 %vm190_vm2, %v2604_v40 }
 0xe45   :  { %v2571_v43 = vpop.xlane.xlu1 %2570 }
 0xe46   :  { %4061 = vrcp.f32 %v2571_v43 }
 0xe47   :  { %4063 = vrcp.f32 %v2577_v31  ;;  %v3581_v31 = vld [vmem:[%s4747_s3 + $0x30] sm:$0xff] }
 0xe48   :  { %v3956_v32 = vpack.c.bf16 %v3581_v31, %v3580_v30 }
 0xe49   :  { %v2583_v44 = vpop.xlane.xlu1 %2582 }
 0xe4a   :  { %4065 = vrcp.f32 %v2583_v44  ;;  %3957 = vmatprep.subr.bf16.mxu0 %v3956_v32 }
 0xe4b   :  { %3959 = vmatpush3.bf16.msra.mxu0 %v3956_v32 }
 0xe4c   :  { %3961 = vmatprep.subr.bf16.mxu0 %v3960_v35 }
 0xe4f   :  { %3963 = vmatpush3.bf16.msra.mxu0 %v3960_v35 }
 0xe50   :  { %v4062_v45 = vpop.eup %4061 }
 0xe51   :  { %v2599_v46 = vmul.f32 %v4062_v45, %v4048_v14  ;;  %v4064_v47 = vpop.eup %4063  ;;  %v3579_v45 = vld [vmem:[%s4749_s5 + $0xb] ss:$0 sm:$0xff] }
 0xe52   :  { %v2601_v48 = vmul.f32 %v4064_v47, %v4611_v0 }
 0xe53   :  { %3854 = vmatmul.mubr.msk.f32.vlgmr.msra.gmra.mrb[30].mxu1 %vm190_vm2, %v2599_v46 }
 0xe54   :  { %3862 = vmatpush3.msra.mxu1 %v2835_v41  ;;  %3863 = vmatprep.mubr.msk.f32.mxu1 %vm4102_vm1, %v4101_v24  ;;  %v4066_v49 = vpop.eup %4065 }
 0xe55   :  { %3871 = vmatprep.subr.mxu1 %v4101_v24  ;;  %v2603_v51 = vmul.f32 %v4066_v49, %v4624_v16 }
 0xe56   :  { %v2589_v50 = vpop.xlane.xlu1 %2588 }
 0xe57   :  { %4067 = vrcp.f32 %v2589_v50  ;;  %3864 = vmatmul.mubr.msk.f32.vlgmr.msra.gmra.mrb[32].mxu1 %vm190_vm2, %v2601_v48 }
 0xe58   :  { %3872 = vmatpush3.msra.mxu1 %v2987_v42  ;;  %3873 = vmatprep.mubr.msk.f32.mxu1 %vm4102_vm1, %v4101_v24  ;;  %v3578_v42 = vld [vmem:[%s4749_s5 + $0xa] ss:$0 sm:$0xff] }
 0xe59   :  { %3881 = vmatprep.subr.mxu1 %v4101_v24 }
 0xe5a   :  { %v3139_v52 = vpop.permute.xlu1 %3138 }
 0xe5b   :  { %3874 = vmatmul.mubr.msk.f32.vlgmr.msra.gmra.mrb[34].mxu1 %vm190_vm2, %v2603_v51 }
 0xe5c   :  { %3882 = vmatpush3.msra.mxu1 %v3139_v52  ;;  %3883 = vmatprep.mubr.msk.f32.mxu1 %vm4102_vm1, %v4101_v24  ;;  %v3575_v24 = vld [vmem:[%s4749_s5 + $0xc] ss:$0 sm:$0xff]  ;;  %v3588_v52 = vld [vmem:[%s4748_s4 + $0x40] sm:$0xff] }
 0xe61   :  { %v4068_v53 = vpop.eup %4067 }
 0xe62   :  { %v2605_v54 = vmul.f32 %v4068_v53, %v4052_v8  ;;  %v3589_v53 = vld [vmem:[%s4748_s4 + $0x48] sm:$0xff] }
 0xe64   :  { %3884 = vmatmul.mubr.msk.f32.vlgmr.msra.gmra.mrb[36].mxu1 %vm190_vm2, %v2605_v54  ;;  %v3964_v54 = vpack.c.bf16 %v3589_v53, %v3588_v52 }
 0xe66   :  { %3965 = vmatprep.subr.bf16.mxu1 %v3964_v54 }
 0xe67   :  { %3967 = vmatpush3.bf16.msra.mxu1 %v3964_v54 }
 0xea4   :  { %v2678_v55 = vpop.f32.mrb[30].mxu0 }
 0xea5   :  { %v3850_v56 = vpop.f32.mrb[31].mxu0 }
 0xea6   :  { %v3591_v56 = vld [vmem:[%s4748_s4 + $0x58] sm:$0xff] }
 0xef9   :  { %v2830_v57 = vpop.f32.mrb[32].mxu0 }
 0xefa   :  { %v3860_v58 = vpop.f32.mrb[33].mxu0 }
 0xefb   :  { %v3592_v58 = vld [vmem:[%s4748_s4 + $0x60] sm:$0xff] }
 0xf01   :  { %v2982_v59 = vpop.f32.mrb[34].mxu0 }
 0xf02   :  { %v3870_v62 = vpop.f32.mrb[35].mxu0 }
 0xf05   :  { %v3134_v63 = vpop.f32.mrb[36].mxu0 }
 0xf06   :  { %v3880_v0 = vpop.f32.mrb[37].mxu0 }
 0xf07   :  { %v3595_v0 = vld [vmem:[%s4748_s4 + $0x78] sm:$0xff] }
 0xf26   :  { %v2754_v1 = vpop.f32.mrb[30].mxu1 }
 0xf27   :  { %v3214_v2 = vadd.f32 %v2754_v1, %v2678_v55  ;;  %v3855_v6 = vpop.f32.mrb[31].mxu1  ;;  %v3590_v55 = vld [vmem:[%s4748_s4 + $0x50] sm:$0xff] }
 0xf29   :  { %v3216_v60 = vadd.f32 %v3214_v2, %v2830_v57  ;;  %v3968_v57 = vpack.c.bf16 %v3591_v56, %v3590_v55  ;;  %v3585_v2 = vld [vmem:[%s4747_s3 + $0x48] ss:$0 sm:$0xff] }
 0xf2a   :  { %v2906_v7 = vpop.f32.mrb[32].mxu1 }
 0xf2b   :  { %v3218_v3 = vadd.f32 %v3216_v60, %v2906_v7  ;;  %v3865_v9 = vpop.f32.mrb[33].mxu1  ;;  %3969 = vmatprep.subr.bf16.mxu1 %v3968_v57 }
 0xf2c   :  { %3971 = vmatpush3.bf16.msra.mxu1 %v3968_v57 }
 0xf2d   :  { %v3220_v5 = vadd.f32 %v3218_v3, %v4447_v19 }
 0xf2e   :  { %v3058_v10 = vpop.f32.mrb[34].mxu1 }
 0xf2f   :  { %v4665_v12 = vadd.f32 %v3575_v24, %v3220_v5  ;;  %v3215_v13 = vadd.f32 %v3058_v10, %v2982_v59  ;;  %v3875_v14 = vpop.f32.mrb[35].mxu1  ;;  %v3593_v59 = vld [vmem:[%s4748_s4 + $0x68] sm:$0xff] }
 0xf30   :  { %v3972_v62 = vpack.c.bf16 %v3593_v59, %v3592_v58 }
 0xf31   :  { %v3231_v15 = vsel %vm31_vm0, %v4665_v12, 0.0  ;;  %v3217_v16 = vadd.f32 %v3215_v13, %v3134_v63  ;;  %v3594_v63 = vld [vmem:[%s4748_s4 + $0x70] sm:$0xff] }
 0xf32   :  { %3232 = vadd.xlane.f32.xlu0 %v3231_v15  ;;  %3973 = vmatprep.subr.bf16.mxu1 %v3972_v62  ;;  %v3976_v1 = vpack.c.bf16 %v3595_v0, %v3594_v63 }
 0xf33   :  { %3975 = vmatpush3.bf16.msra.mxu1 %v3972_v62 }
 0xf34   :  { %3977 = vmatprep.subr.bf16.mxu1 %v3976_v1 }
 0xf37   :  { %v3210_v4 = vpop.f32.mrb[36].mxu1  ;;  %3979 = vmatpush3.bf16.msra.mxu1 %v3976_v1 }
 0xf38   :  { %v3219_v11 = vadd.f32 %v3217_v16, %v3210_v4  ;;  %v3885_v17 = vpop.f32.mrb[37].mxu1 }
 0xf3a   :  { %v3221_v21 = vadd.f32 %v3219_v11, %v4445_v18 }
 0xf3c   :  { %v4670_v20 = vadd.f32 %v3575_v24, %v3221_v21 }
 0xf3e   :  { %v3234_v19 = vsel %vm31_vm0, %v4670_v20, 0.0 }
 0xf3f   :  { %3235 = vadd.xlane.f32.xlu1 %v3234_v19 }
 0xfbf   :  { %v3233_v22 = vpop.xlane.xlu0 %3232 }
 0xfc0   :  { %v3237_v23 = vmul.f32 0.03125, %v3233_v22 }
 0xfc2   :  { %v3239_v25 = vsub.f32 %v4665_v12, %v3237_v23 }
 0xfc4   :  { %v3241_v26 = vmul.f32 %v3239_v25, %v3239_v25 }
 0xfc6   :  { %v3243_v8 = vsel %vm31_vm0, %v3241_v26, 0.0 }
 0xfc7   :  { %3244 = vadd.xlane.f32.xlu0 %v3243_v8 }
 0xfcc   :  { %v3236_v61 = vpop.xlane.xlu1 %3235 }
 0xfcd   :  { %v3238_v27 = vmul.f32 0.03125, %v3236_v61 }
 0xfcf   :  { %v3240_v28 = vsub.f32 %v4670_v20, %v3238_v27  ;;  %v3599_v27 = vld [vmem:[%s4749_s5 + $0xd] ss:$0 sm:$0xff] }
 0xfd1   :  { %v3242_v29 = vmul.f32 %v3240_v28, %v3240_v28 }
 0xfd3   :  { %v3246_v18 = vsel %vm31_vm0, %v3242_v29, 0.0 }
 0xfd4   :  { %3247 = vadd.xlane.f32.xlu0 %v3246_v18 }
0x1054   :  { %v3245_v36 = vpop.xlane.xlu0 %3244 }
0x1055   :  { %v3249_v37 = vmul.f32 0.03125, %v3245_v36 }
0x1057   :  { %v3251_v38 = vadd.f32 1e-05, %v3249_v37 }
0x1059   :  { %4069 = vrsqrt.f32 %v3251_v38 }
0x1061   :  { %v3248_v39 = vpop.xlane.xlu0 %3247 }
0x1062   :  { %v3250_v40 = vmul.f32 0.03125, %v3248_v39 }
0x1063   :  { %v4070_v41 = vpop.eup %4069 }
0x1064   :  { %v3252_v43 = vadd.f32 1e-05, %v3250_v40  ;;  %v3255_v44 = vmul.f32 %v4070_v41, %v3239_v25 }
0x1066   :  { %4071 = vrsqrt.f32 %v3252_v43  ;;  %v3261_v46 = vmul.f32 %v3578_v42, %v3255_v44 }
0x1068   :  { %v3267_v47 = vadd.f32 %v3579_v45, %v3261_v46 }
0x106a   :  { %3894 = vmatprep.mubr.msk.f32.mxu0 %vm31_vm0, %v3267_v47 }
0x1070   :  { %v4072_v48 = vpop.eup %4071 }
0x1071   :  { %v3256_v49 = vmul.f32 %v4072_v48, %v3240_v28 }
0x1073   :  { %v3262_v50 = vmul.f32 %v3578_v42, %v3256_v49 }
0x1075   :  { %v3268_v51 = vadd.f32 %v3579_v45, %v3262_v50 }
0x1077   :  { %3895 = vmatmul.mubr.msk.f32.vlgmr.msra.gmra.mrb[38].mxu0 %vm31_vm0, %v3268_v51 }
0x114a   :  { %v3896_v6 = vpop.f32.mrb[38].mxu0 }
0x114b   :  { %v3357_v60 = vadd.f32 %v3896_v6, %v3585_v2  ;;  %v3351_v7 = vpop.f32.mrb[39].mxu0 }
0x114c   :  { %v3352_v3 = vadd.f32 %v3585_v2, %v3351_v7 }
0x114d   :  { %v3363_v9 = vmul.f32 %v3357_v60, %v3357_v60  ;;  %v3361_v25 = vmul.f32 0.5, %v3357_v60 }
0x114e   :  { %v3362_v24 = vmul.f32 %v3352_v3, %v3352_v3  ;;  %v3360_v22 = vmul.f32 0.5, %v3352_v3 }
0x114f   :  { %v3365_v5 = vmul.f32 %v3363_v9, %v3357_v60 }
0x1150   :  { %v3364_v10 = vmul.f32 %v3362_v24, %v3352_v3 }
0x1151   :  { %v3367_v13 = vmul.f32 0.044715, %v3365_v5 }
0x1152   :  { %v3366_v14 = vmul.f32 0.044715, %v3364_v10 }
0x1153   :  { %v3369_v15 = vadd.f32 %v3367_v13, %v3357_v60 }
0x1154   :  { %v3368_v16 = vadd.f32 %v3366_v14, %v3352_v3 }
0x1155   :  { %v3371_v4 = vmul.f32 0.7978846, %v3369_v15 }
0x1156   :  { %v3370_v11 = vmul.f32 0.7978846, %v3368_v16 }
0x1157   :  { %4073 = vtanh.f32 %v3371_v4 }
0x1158   :  { %4075 = vtanh.f32 %v3370_v11 }
0x1161   :  { %v4074_v17 = vpop.eup %4073 }
0x1162   :  { %v4076_v21 = vpop.eup %4075  ;;  %v3375_v19 = vadd.f32 1.0, %v4074_v17 }
0x1163   :  { %v3374_v23 = vadd.f32 1.0, %v4076_v21 }
0x1164   :  { %v3377_v8 = vmul.f32 %v3375_v19, %v3361_v25 }
0x1165   :  { %v3376_v26 = vmul.f32 %v3374_v23, %v3360_v22 }
0x1167   :  { %3913 = vmatprep.mubr.msk.f32.mxu1 %vm1662_vm3, %v3376_v26 }
0x1168   :  { %3914 = vmatmul.mubr.msk.f32.vlgmr.msra.gmra.mrb[38].mxu1 %vm1662_vm3, %v3377_v8 }
0x123b   :  { %v3915_v61 = vpop.f32.mrb[38].mxu1 }
0x123c   :  { %v3469_v28 = vadd.f32 %v3915_v61, %v4670_v20  ;;  %v3459_v29 = vpop.f32.mrb[39].mxu1 }
0x123d   :  { %v3468_v18 = vadd.f32 %v3459_v29, %v4665_v12 }
0x123e   :  { %v3476_v30 = vadd.f32 %v3599_v27, %v3469_v28 }
0x123f   :  { %v3475_v31 = vadd.f32 %v3599_v27, %v3468_v18 }
0x1240   :  { %v3479_v32 = vrot.slane %v3476_v30, 7 }
0x1242   :  { %v3481_v33 = vsel %vm3480_vm4, %v3479_v32, %v3475_v31 }
0x1243   :  { %3484 = vst.msk [vmem:[#allocation2] sm:$0x3] %vm3483_vm5, %v3481_v33 }
0x1244   :  { %4088 = shalt.err (!%p4085_p4)
}
0x1245   :  { %s4089_s17 = scalar_lea.hbm %s4750_s6, 32 }
0x1246   :  { %p4090_p5 = scmp.ne.s32.totalorder %s4750_s6, %s4089_s17  ;;  %p4093_p6 = scmp.lt.u32.totalorder %s4089_s17, %s4750_s6 }
0x1248   :  { %p4095_p7 = pnand %p4093_p6, %p4090_p5 }
0x124a   :  { %4098 = shalt.err (!%p4095_p7)
}
0x124b   :  { %3494 = dma.vmem_to_hbm [thread:$0]  %s3492_s14, 32, %s4750_s6, [#allocation3]  }
0x124c   :  { %4099 = dma.done.wait [#allocation3], 32  }
0x124d   :  { %4100 = vsyncadd [#allocation3], 4294967264 }
0x124e   :  { %3498 = vsyncpa [#allocation3], 1 }

</bundles_post_ra>
